<compile_context>
chip_gen: v5e
topology: v5e:2x2
jax: 0.10.0
libtpu: 0.0.40
codegen_flags: <defaults>
</compile_context>

<pallas_src>
import jax
import jax.numpy as jnp
from jax.experimental import pallas as pl
from jax.experimental.pallas import tpu as pltpu

# Fused-head lane layout inside the (B, 128) output slab.
NG = 31          # grouped_age width
NGEN = 2         # gender width
NEMO = 7         # emotions width
GROUPED_LO = 0
GENDER_LO = NG                    # 31
EMO_LO = NG + NGEN                # 33
REG_LANE = NG + NGEN + NEMO       # 40
NOUT = 128                        # lane-dense output width
FEAT = 512                        # encoder feature dim


def _multitask_kernel(x_ref, we_ref, wh_ref, misc_ref, out_ref, feat_acc):
    """Grid = (B tiles, K tiles).  K is the reduction over flattened image features."""
    k = pl.program_id(1)

    @pl.when(k == 0)
    def _init():
        feat_acc[...] = jnp.zeros_like(feat_acc)

    # Stand-in encoder: x @ we, bf16 inputs, f32 MXU accumulation, K-tiled.
    feat_acc[...] += jnp.dot(
        x_ref[...], we_ref[...], preferred_element_type=jnp.float32
    )

    @pl.when(k == pl.num_programs(1) - 1)
    def _heads():
        feat = feat_acc[...]                      # (TB, 512) f32
        bias = misc_ref[0:1, :]                   # (1, 128) fused head bias (incl. encoder bias)
        idx3 = misc_ref[1:2, :]                   # (1, 128) idx*3 in lanes 0:NG, zeros elsewhere

        # One fused lane-dense head matmul: [grouped | gender | emotions | pad].
        heads = (
            jnp.dot(feat, wh_ref[...], preferred_element_type=jnp.float32) + bias
        )                                         # (TB, 128)

        lane = jax.lax.broadcasted_iota(jnp.int32, heads.shape, 1)
        in_group = lane < NG

        # Softmax over the grouped_age lanes only (others masked to -inf -> exp == 0).
        masked = jnp.where(in_group, heads, -jnp.inf)
        m = jnp.max(masked, axis=1, keepdims=True)
        e = jnp.exp(masked - m)
        p = e * pl.reciprocal(jnp.sum(e, axis=1, keepdims=True), approx=True)
        reg = jnp.sum(p * idx3, axis=1, keepdims=True)   # (TB, 1), *3 already folded into idx3

        # Single lane-dense store: regression value placed in lane REG_LANE.
        out_ref[...] = jnp.where(lane == REG_LANE, reg, heads)


def multitask_forward(x_nchw, params, *, tb=16, tk=512):
    """x_nchw: (B, C, H, W) float32.  Returns [gender, (grouped_age, regression_age), emotions]."""
    (we, be, w1, b1, w2, b2, w3, b3, wg, bg, idx) = params

    B = x_nchw.shape[0]
    x_flat = x_nchw.reshape(B, -1).astype(jnp.float32)
    F = x_flat.shape[1]

    # Pad batch / feature dims to tile multiples (zero padding is exact for the matmul).
    B_pad = ((B + tb - 1) // tb) * tb
    F_pad = ((F + tk - 1) // tk) * tk
    x_pad = jnp.pad(x_flat, ((0, B_pad - B), (0, F_pad - F)))
    we_pad = jnp.pad(we, ((0, F_pad - F), (0, 0)))

    # bf16 feed for the encoder matmul (f32 accumulation inside the kernel).
    x_bf = x_pad.astype(jnp.bfloat16)
    we_bf = we_pad.astype(jnp.bfloat16)

    # --- Fold fc2 + age_group_head and fuse all heads into one (512, 128) matmul ---
    wg_f = w2 @ wg                    # (512, 31)
    bg_f = b2 @ wg + bg               # (1, 31)

    W_heads = jnp.zeros((FEAT, NOUT), jnp.float32)
    W_heads = W_heads.at[:, GROUPED_LO:GROUPED_LO + NG].set(wg_f)
    W_heads = W_heads.at[:, GENDER_LO:GENDER_LO + NGEN].set(w1)
    W_heads = W_heads.at[:, EMO_LO:EMO_LO + NEMO].set(w3)

    B_heads = jnp.zeros((1, NOUT), jnp.float32)
    B_heads = B_heads.at[:, GROUPED_LO:GROUPED_LO + NG].set(bg_f)
    B_heads = B_heads.at[:, GENDER_LO:GENDER_LO + NGEN].set(b1)
    B_heads = B_heads.at[:, EMO_LO:EMO_LO + NEMO].set(b3)
    # Fold the encoder bias:  (x@we + be)@Wh + Bh  ==  (x@we)@Wh + (be@Wh + Bh)
    B_heads = B_heads + be @ W_heads

    idx3 = jnp.zeros((1, NOUT), jnp.float32).at[:, :NG].set(idx * 3.0)
    misc = jnp.concatenate([B_heads, idx3], axis=0)    # (2, 128): bias row + idx row

    grid = (B_pad // tb, F_pad // tk)

    grid_spec = pltpu.PrefetchScalarGridSpec(
        num_scalar_prefetch=0,
        grid=grid,
        in_specs=[
            pl.BlockSpec((tb, tk), lambda b, k: (b, k)),        # x tile
            pl.BlockSpec((tk, FEAT), lambda b, k: (k, 0)),      # encoder weight K-tile
            pl.BlockSpec((FEAT, NOUT), lambda b, k: (0, 0)),    # fused head weight (resident)
            pl.BlockSpec((2, NOUT), lambda b, k: (0, 0)),       # fused bias + idx (resident)
        ],
        out_specs=pl.BlockSpec((tb, NOUT), lambda b, k: (b, 0)),
        scratch_shapes=[pltpu.VMEM((tb, FEAT), jnp.float32)],    # feat accumulator
    )

    cost = pl.CostEstimate(
        flops=2 * B_pad * F_pad * FEAT + 2 * B_pad * FEAT * NOUT,
        transcendentals=B_pad * NOUT,
        bytes_accessed=(B_pad * F_pad + F_pad * FEAT) * 2
        + (FEAT * NOUT + 2 * NOUT + B_pad * NOUT) * 4,
    )

    slab = pl.pallas_call(
        _multitask_kernel,
        out_shape=jax.ShapeDtypeStruct((B_pad, NOUT), jnp.float32),
        grid_spec=grid_spec,
        compiler_params=pltpu.CompilerParams(
            dimension_semantics=("parallel", "arbitrary"),
        ),
        cost_estimate=cost,
    )(x_bf, we_bf, W_heads, misc)

    # Split the lane-dense slab in the wrapper (free XLA plumbing).
    gender = slab[:B, GENDER_LO:GENDER_LO + NGEN]
    grouped_age = slab[:B, GROUPED_LO:GROUPED_LO + NG]
    emotions = slab[:B, EMO_LO:EMO_LO + NEMO]
    regression_age = slab[:B, REG_LANE]
    return [gender, (grouped_age, regression_age), emotions]


def init_params(key, in_features):
    """Deterministic parameter init (shapes from the module's __init__)."""
    ks = jax.random.split(key, 10)

    def lin(kw, kb, fan_in, fan_out):
        bound = 1.0 / jnp.sqrt(fan_in)
        w = jax.random.uniform(kw, (fan_in, fan_out), jnp.float32, -bound, bound)
        b = jax.random.uniform(kb, (1, fan_out), jnp.float32, -bound, bound)
        return w, b

    we, be = lin(ks[0], ks[1], in_features, FEAT)   # stand-in encoder
    w1, b1 = lin(ks[2], ks[3], FEAT, NGEN)          # fc1  (gender)
    w2, b2 = lin(ks[4], ks[5], FEAT, 90)            # fc2  (age)
    w3, b3 = lin(ks[6], ks[7], FEAT, NEMO)          # fc3  (emotions)
    wg, bg = lin(ks[8], ks[9], 90, NG)              # age_group_head
    idx = jnp.arange(NG, dtype=jnp.float32).reshape(1, NG)  # idx_tensor
    return (we, be, w1, b1, w2, b2, w3, b3, wg, bg, idx)


def _reference(x_nchw, params):
    """Pure-JAX reference with the original (unfolded) module math.

    The encoder matmul mirrors the kernel's bf16-input / f32-accumulate MXU path.
    """
    (we, be, w1, b1, w2, b2, w3, b3, wg, bg, idx) = params
    x = x_nchw.reshape(x_nchw.shape[0], -1).astype(jnp.float32)
    feat = jnp.dot(
        x.astype(jnp.bfloat16), we.astype(jnp.bfloat16),
        preferred_element_type=jnp.float32,
    ) + be
    gender = feat @ w1 + b1
    age = feat @ w2 + b2
    emotions = feat @ w3 + b3
    grouped = age @ wg + bg
    p = jax.nn.softmax(grouped, axis=1)
    reg = jnp.sum(p * idx, axis=1) * 3.0
    return gender, grouped, reg, emotions


if __name__ == "__main__":
    key = jax.random.PRNGKey(0)
    k_x, k_p = jax.random.split(key)

    B, C, H, W = 2, 4, 16, 16
    x = jax.random.normal(k_x, (B, C, H, W), dtype=jnp.float32)
    params = init_params(k_p, C * H * W)

    fwd = jax.jit(multitask_forward, static_argnames=("tb", "tk"))
    gender, (grouped_age, regression_age), emotions = fwd(x, params)
    jax.block_until_ready((gender, grouped_age, regression_age, emotions))

    rg, rgr, rr, re = _reference(x, params)

    assert gender.shape == (B, 2)
    assert grouped_age.shape == (B, NG)
    assert regression_age.shape == (B,)
    assert emotions.shape == (B, NEMO)
    # Tolerances account for the bf16 encoder matmul, head folding, and
    # the EUP approximate reciprocal in the softmax.
    assert jnp.allclose(gender, rg, atol=1e-2, rtol=1e-2)
    assert jnp.allclose(grouped_age, rgr, atol=1e-2, rtol=1e-2)
    assert jnp.allclose(regression_age, rr, atol=1e-2, rtol=1e-2)
    assert jnp.allclose(emotions, re, atol=1e-2, rtol=1e-2)

    print("KERNEL_OK")
</pallas_src>

<mosaic_0001>
module attributes {stable_mosaic.version = 11 : i64} {
  func.func @_multitask_kernel(%arg0: i32, %arg1: i32, %arg2: memref<16x512xbf16, #tpu.memory_space<vmem>>, %arg3: memref<512x512xbf16, #tpu.memory_space<vmem>>, %arg4: memref<512x128xf32, #tpu.memory_space<vmem>>, %arg5: memref<2x128xf32, #tpu.memory_space<vmem>>, %arg6: memref<16x128xf32, #tpu.memory_space<vmem>>, %arg7: memref<16x512xf32, #tpu.memory_space<vmem>>) attributes {dimension_semantics = [#tpu.dimension_semantics<parallel>, #tpu.dimension_semantics<arbitrary>], iteration_bounds = array<i64: 1, 2>, scalar_prefetch = 0 : i64, scratch_operands = 1 : i64, tpu.core_type = #tpu.core_type<tc>, window_params = [{transform_indices = @transform_0, window_bounds = array<i64: 16, 512>}, {transform_indices = @transform_1, window_bounds = array<i64: 512, 512>}, {pipeline_mode = #tpu.pipeline_mode<synchronous>, transform_indices = @transform_2, window_bounds = array<i64: 512, 128>}, {pipeline_mode = #tpu.pipeline_mode<synchronous>, transform_indices = @transform_3, window_bounds = array<i64: 2, 128>}, {transform_indices = @transform_4, window_bounds = array<i64: 16, 128>}]} {
    %c0_i32 = arith.constant 0 : i32
    %0 = arith.cmpi eq, %arg1, %c0_i32 : i32
    %1 = arith.extui %0 : i1 to i32
    %c0_i32_0 = arith.constant 0 : i32
    %2 = arith.cmpi ne, %1, %c0_i32_0 : i32
    scf.if %2 {
      %cst_9 = arith.constant 0.000000e+00 : f32
      %12 = vector.broadcast %cst_9 : f32 to vector<16x512xf32>
      %c0_10 = arith.constant 0 : index
      %c0_11 = arith.constant 0 : index
      %13 = vector.load %arg7[%c0_10, %c0_11] : memref<16x512xf32, #tpu.memory_space<vmem>>, vector<16x512xf32>
      tpu.vector_store %arg7[%c0_10, %c0_11], %12 {strides = array<i32>} : memref<16x512xf32, #tpu.memory_space<vmem>>, vector<16x512xf32>,
    } else {
    }
    %c0 = arith.constant 0 : index
    %c0_1 = arith.constant 0 : index
    %3 = vector.load %arg7[%c0, %c0_1] : memref<16x512xf32, #tpu.memory_space<vmem>>, vector<16x512xf32>
    %c0_2 = arith.constant 0 : index
    %c0_3 = arith.constant 0 : index
    %4 = vector.load %arg2[%c0_2, %c0_3] : memref<16x512xbf16, #tpu.memory_space<vmem>>, vector<16x512xbf16>
    %c0_4 = arith.constant 0 : index
    %c0_5 = arith.constant 0 : index
    %5 = vector.load %arg3[%c0_4, %c0_5] : memref<512x512xbf16, #tpu.memory_space<vmem>>, vector<512x512xbf16>
    %cst = arith.constant dense<0.000000e+00> : vector<16x512xf32>
    %6 = tpu.matmul %4, %5, %cst {dimension_numbers = #tpu.dot_dimension_numbers<[1], [0], [0], [1], [0, 0, 1, 1], [], []>} : vector<16x512xbf16>, vector<512x512xbf16>, vector<16x512xf32> -> vector<16x512xf32>
    %7 = arith.addf %3, %6 : vector<16x512xf32>
    %c0_6 = arith.constant 0 : index
    %c0_7 = arith.constant 0 : index
    %8 = vector.load %arg7[%c0_6, %c0_7] : memref<16x512xf32, #tpu.memory_space<vmem>>, vector<16x512xf32>
    tpu.vector_store %arg7[%c0_6, %c0_7], %7 {strides = array<i32>} : memref<16x512xf32, #tpu.memory_space<vmem>>, vector<16x512xf32>,
    %c1_i32 = arith.constant 1 : i32
    %9 = arith.cmpi eq, %arg1, %c1_i32 : i32
    %10 = arith.extui %9 : i1 to i32
    %c0_i32_8 = arith.constant 0 : i32
    %11 = arith.cmpi ne, %10, %c0_i32_8 : i32
    scf.if %11 {
      %c0_9 = arith.constant 0 : index
      %c0_10 = arith.constant 0 : index
      %12 = vector.load %arg7[%c0_9, %c0_10] : memref<16x512xf32, #tpu.memory_space<vmem>>, vector<16x512xf32>
      %c0_11 = arith.constant 0 : index
      %c0_12 = arith.constant 0 : index
      %13 = vector.load %arg5[%c0_11, %c0_12] : memref<2x128xf32, #tpu.memory_space<vmem>>, vector<1x128xf32>
      %c1 = arith.constant 1 : index
      %c0_13 = arith.constant 0 : index
      %14 = vector.load %arg5[%c1, %c0_13] : memref<2x128xf32, #tpu.memory_space<vmem>>, vector<1x128xf32>
      %c0_14 = arith.constant 0 : index
      %c0_15 = arith.constant 0 : index
      %15 = vector.load %arg4[%c0_14, %c0_15] : memref<512x128xf32, #tpu.memory_space<vmem>>, vector<512x128xf32>
      %cst_16 = arith.constant dense<0.000000e+00> : vector<16x128xf32>
      %16 = tpu.matmul %12, %15, %cst_16 {dimension_numbers = #tpu.dot_dimension_numbers<[1], [0], [0], [1], [0, 0, 1, 1], [], []>} : vector<16x512xf32>, vector<512x128xf32>, vector<16x128xf32> -> vector<16x128xf32>
      %17 = vector.broadcast %13 : vector<1x128xf32> to vector<16x128xf32>
      %18 = arith.addf %16, %17 : vector<16x128xf32>
      %19 = tpu.iota {dimensions = array<i32: 1>} : vector<16x128xi32>
      %c31_i32 = arith.constant 31 : i32
      %20 = vector.broadcast %c31_i32 : i32 to vector<16x128xi32>
      %21 = arith.cmpi slt, %19, %20 : vector<16x128xi32>
      %cst_17 = arith.constant 0xFF800000 : f32
      %22 = vector.broadcast %cst_17 : f32 to vector<16x128xf32>
      %23 = arith.select %21, %18, %22 : vector<16x128xi1>, vector<16x128xf32>
      %cst_18 = arith.constant dense<0xFF800000> : vector<16xf32>
      %24 = vector.multi_reduction <maximumf>, %23, %cst_18 [1] : vector<16x128xf32> to vector<16xf32>
      %25 = vector.shape_cast %24 : vector<16xf32> to vector<16x1xf32>
      %26 = vector.broadcast %25 : vector<16x1xf32> to vector<16x128xf32>
      %27 = arith.subf %23, %26 : vector<16x128xf32>
      %28 = math.exp %27 : vector<16x128xf32>
      %cst_19 = arith.constant dense<0.000000e+00> : vector<16xf32>
      %29 = vector.multi_reduction <add>, %28, %cst_19 [1] : vector<16x128xf32> to vector<16xf32>
      %30 = vector.shape_cast %29 : vector<16xf32> to vector<16x1xf32>
      %31 = tpu.reciprocal %30 {approx = true} : vector<16x1xf32> -> vector<16x1xf32>
      %32 = vector.broadcast %31 : vector<16x1xf32> to vector<16x128xf32>
      %33 = arith.mulf %28, %32 : vector<16x128xf32>
      %34 = vector.broadcast %14 : vector<1x128xf32> to vector<16x128xf32>
      %35 = arith.mulf %33, %34 : vector<16x128xf32>
      %cst_20 = arith.constant dense<0.000000e+00> : vector<16xf32>
      %36 = vector.multi_reduction <add>, %35, %cst_20 [1] : vector<16x128xf32> to vector<16xf32>
      %37 = vector.shape_cast %36 : vector<16xf32> to vector<16x1xf32>
      %c40_i32 = arith.constant 40 : i32
      %38 = vector.broadcast %c40_i32 : i32 to vector<16x128xi32>
      %39 = arith.cmpi eq, %19, %38 : vector<16x128xi32>
      %40 = vector.shape_cast %37 : vector<16x1xf32> to vector<16x1xf32>
      %41 = vector.broadcast %40 : vector<16x1xf32> to vector<16x128xf32>
      %42 = arith.select %39, %41, %18 : vector<16x128xi1>, vector<16x128xf32>
      %c0_21 = arith.constant 0 : index
      %c0_22 = arith.constant 0 : index
      %43 = vector.load %arg6[%c0_21, %c0_22] : memref<16x128xf32, #tpu.memory_space<vmem>>, vector<16x128xf32>
      tpu.vector_store %arg6[%c0_21, %c0_22], %42 {strides = array<i32>} : memref<16x128xf32, #tpu.memory_space<vmem>>, vector<16x128xf32>,
    } else {
    }
    return
  }
  func.func @transform_0(%arg0: i32, %arg1: i32) -> (i32, i32) {
    %c0_i32 = arith.constant 0 : i32
    return %arg0, %arg1 : i32, i32
  }
  func.func @transform_1(%arg0: i32, %arg1: i32) -> (i32, i32) {
    %c0_i32 = arith.constant 0 : i32
    %c0_i32_0 = arith.constant 0 : i32
    return %arg1, %c0_i32 : i32, i32
  }
  func.func @transform_2(%arg0: i32, %arg1: i32) -> (i32, i32) {
    %c0_i32 = arith.constant 0 : i32
    %c0_i32_0 = arith.constant 0 : i32
    %c0_i32_1 = arith.constant 0 : i32
    return %c0_i32, %c0_i32_0 : i32, i32
  }
  func.func @transform_3(%arg0: i32, %arg1: i32) -> (i32, i32) {
    %c0_i32 = arith.constant 0 : i32
    %c0_i32_0 = arith.constant 0 : i32
    %c0_i32_1 = arith.constant 0 : i32
    return %c0_i32, %c0_i32_0 : i32, i32
  }
  func.func @transform_4(%arg0: i32, %arg1: i32) -> (i32, i32) {
    %c0_i32 = arith.constant 0 : i32
    %c0_i32_0 = arith.constant 0 : i32
    return %arg0, %c0_i32 : i32, i32
  }
}

</mosaic_0001>

<bundles_post_ra>
// kernel: multitask_forward.1
= control target key start
LH: loop header
LB: loop body
LE: loop exit
PB: predicated region body
PF: predicated region fallthrough
CT: control target
= control target key end

     0   :  { %s2406_s15 = smov 0   ;;  %s2408_s16 = smov 0   ;;  %s2969_s0 = inlined_call_operand.vmem [shape: bf16[16,1024], index: 0, kind: input, shape index: {}]   ;;  %s2970_s1 = inlined_call_operand.vmem [shape: bf16[1024,512], index: 1, kind: input, shape index: {}]   ;;  %s2971_s2 = inlined_call_operand.vmem [shape: f32[512,128], index: 2, kind: input, shape index: {}]   ;;  %s2972_s3 = inlined_call_operand.vmem [shape: f32[2,128], index: 3, kind: input, shape index: {}]   ;;  %s2973_s4 = inlined_call_operand.vmem [shape: f32[16,128], index: 4, kind: output, shape index: {}]  }
   0x1   :  { %s2410_s17 = smov 0   ;;  %s2412_s18 = smov 0  }
   0x2   :  { %s2414_s19 = smov 0  }
   0x3 LB: > { %s23_s20 = sadd.s32 1, %s2374_s18  ;;  %p42_p1 = scmp.ne.s32.totalorder %s2366_s16, %s2362_s15  ;;  %s2378_s19 = sphi %s2414_s19, %s14_s19   ;;  %s2374_s18 = sphi %s2412_s18, %s2977_s18   ;;  %s2370_s17 = sphi %s2410_s17, %s2976_s17   ;;  %s2366_s16 = sphi %s2408_s16, %s2975_s16   ;;  %s2362_s15 = sphi %s2406_s15, %s2974_s15  }
   0x4   : > { %p24_p0 = scmp.ge.s32.totalorder %s23_s20, 2  ;;  %p43_p2 = scmp.eq.s32.totalorder %s2378_s19, 0 }
   0x5   : > { %s35_s22 = sadd.s32 1, %s2366_s16  ;;  %p1612_p5 = scmp.ge.s32.totalorder %s2378_s19, 2 }
   0x6   : > { %s2979_s20 = smov (%p24_p0, %s23_s20), 0  ;;  %p44_p3 = por %p43_p2, %p42_p1 }
   0x7   : > { %s31_s21 = ssub.s32 %s2374_s18, %s2979_s20  ;;  %168 = sbr.rel (%p1612_p5) target bundleno = 20 (0x14), region = 24 }
   0x8   : > { %p33_p4 = scmp.eq.s32.totalorder %s31_s21, 0 }
   0xa   : > { %s2441_s23 = scalar_select %p33_p4, %s2366_s16, %s35_s22  }
   0xc   : > { %171 = sbr.rel (!%p44_p3) target bundleno = 20 (0x14), region = 28  ;;  %s173_s24 = sand.u32 (%p44_p3), 1, %s2366_s16  }
   0xd   : > { %s2155_s25 = sshll.u32 (%p44_p3), %s2374_s18, 4  ;;  %s1613_s26 = sshll.u32 (%p44_p3), %s173_s24, 5 }
   0xe   : > { %s181_s29 = scalar_lea.vmem (%p44_p3), %s2969_s0, %s2155_s25  ;;  %s175_s30 = scalar_lea.vmem (%p44_p3), [#allocation3], %s1613_s26 }
   0xf   : > { %v194_v0 = vld [vmem:[%s181_s29] sm:$0xff] (%p44_p3)  ;;  %v196_v1 = vld [vmem:[%s181_s29 + $0x8] sm:$0xff] (%p44_p3) }
  0x10   : > { %v198_v2 = vld [vmem:[%s181_s29 + $0x20] sm:$0xff] (%p44_p3)  ;;  %195 = vst [vmem:[%s175_s30] sm:$0xff] (%p44_p3), %v194_v0  ;;  %v200_v3 = vld [vmem:[%s181_s29 + $0x28] sm:$0xff] (%p44_p3) }
  0x11   : > { %197 = vst [vmem:[%s175_s30 + $0x8] sm:$0xff] %v196_v1 }
  0x12   : > { %199 = vst [vmem:[%s175_s30 + $0x10] sm:$0xff] %v198_v2 }
  0x13   : > { %201 = vst [vmem:[%s175_s30 + $0x18] sm:$0xff] %v200_v3 }
  0x14 PF: > { %p1616_p6 = scmp.ge.s32.totalorder %s2378_s19, 1  ;;  %p216_p7 = scmp.lt.s32.totalorder %s2378_s19, 3 }
  0x16   : > { %p217_p8 = pnand %p1616_p6, %p216_p7 }
  0x17   : > { %s223_s5 = sand.u32 (!%p217_p8), 1, %s2362_s15   ;;  %s1618_s6 = sshll.u32 (!%p217_p8), %s2370_s17, 6 }
  0x18   : > { %220 = sbr.rel (%p217_p8) target bundleno = 872 (0x368), region = 55  ;;  %s1617_s7 = sshll.u32 (!%p217_p8), %s223_s5, 5 }
  0x19   : > { %p257_p9 = scmp.lt.s32.totalorder (!%p217_p8), %s1618_s6, 127  ;;  %s2458_s12 = scalar_lea.vmem (!%p217_p8), [#allocation3], %s1617_s7 }
  0x1a   : > { %p1621_p10 = scmp.ne.s32.totalorder (!%p217_p8), %s2370_s17, 0 }
  0x1d   : > { %s2981_s6 = smov (!%p257_p9, %s1618_s6), 127  ;;  %272 = sbr.rel (%p1621_p10) target bundleno = 43 (0x2b), region = 63 }
  0x1e   : > { %s2156_s8 = sshll.u32 %s2981_s6, 4 }
  0x1f   : > { %s2456_s11 = scalar_lea.vmem %s2970_s1, %s2156_s8 }
  0x22   : > { %v2380_v4 = vmov 0.0  }
  0x23   : > { %273 = vst [vmem:[#allocation2 + $0x30] sm:$0xff] %v2380_v4 }
  0x24   : > { %274 = vst [vmem:[#allocation2] sm:$0xff] %v2380_v4 }
  0x25   : > { %275 = vst [vmem:[#allocation2 + $0x18] sm:$0xff] %v2380_v4 }
  0x26   : > { %276 = vst [vmem:[#allocation2 + $0x10] sm:$0xff] %v2380_v4 }
  0x27   : > { %277 = vst [vmem:[#allocation2 + $0x8] sm:$0xff] %v2380_v4 }
  0x28   : > { %278 = vst [vmem:[#allocation2 + $0x20] sm:$0xff] %v2380_v4 }
  0x29   : > { %279 = vst [vmem:[#allocation2 + $0x28] sm:$0xff] %v2380_v4 }
  0x2a   : > { %280 = vst [vmem:[#allocation2 + $0x38] sm:$0xff] %v2380_v4 }
  0x2b PF: > { %v1752_v5 = vld [vmem:[%s2456_s11 + $0xe0] sm:$0xf]  ;;  %v2191_v6 = vld [vmem:[%s2456_s11 + $0xec] sm:$0xf0]  ;;  %p2150_p11 = scmp.ne.s32.totalorder %s2370_s17, 1 }
  0x2c   : > { %v1880_v7 = vld [vmem:[%s2456_s11 + $0x1e0] sm:$0xf]  ;;  %v1753_v8 = vor.u32 %v2191_v6, %v1752_v5  ;;  %v2223_v9 = vld [vmem:[%s2456_s11 + $0x1ec] sm:$0xf0] }
  0x2d   : > { %v2008_v10 = vld [vmem:[%s2456_s11 + $0x2e0] sm:$0xf]  ;;  %v2255_v11 = vld [vmem:[%s2456_s11 + $0x2ec] sm:$0xf0]  ;;  %v1881_v12 = vor.u32 %v2223_v9, %v1880_v7 }
  0x2e   : > { %v2009_v13 = vor.u32 %v2255_v11, %v2008_v10  ;;  %v2136_v14 = vld [vmem:[%s2456_s11 + $0x3e0] sm:$0xf]  ;;  %v2287_v15 = vld [vmem:[%s2456_s11 + $0x3ec] sm:$0xf0]  ;;  %1081 = vmatpush.bf16.msra.mxu0 %v1753_v8 }
  0x2f   : > { %v1736_v16 = vld [vmem:[%s2456_s11 + $0xc0] sm:$0xf]  ;;  %v2137_v17 = vor.u32 %v2287_v15, %v2136_v14  ;;  %v2187_v18 = vld [vmem:[%s2456_s11 + $0xcc] sm:$0xf0]  ;;  %1095 = vmatpush.bf16.msra.mxu1 %v1881_v12 }
  0x30   : > { %v1864_v19 = vld [vmem:[%s2456_s11 + $0x1c0] sm:$0xf]  ;;  %v2219_v20 = vld [vmem:[%s2456_s11 + $0x1cc] sm:$0xf0]  ;;  %1109 = vmatpush.bf16.msra.mxu2 %v2009_v13  ;;  %v1737_v21 = vor.u32 %v2187_v18, %v1736_v16 }
  0x31   : > { %v1865_v22 = vor.u32 %v2219_v20, %v1864_v19  ;;  %v1992_v23 = vld [vmem:[%s2456_s11 + $0x2c0] sm:$0xf]  ;;  %v2251_v24 = vld [vmem:[%s2456_s11 + $0x2cc] sm:$0xf0]  ;;  %1123 = vmatpush.bf16.msra.mxu3 %v2137_v17 }
  0x32   : > { %v2120_v25 = vld [vmem:[%s2456_s11 + $0x3c0] sm:$0xf]  ;;  %v1993_v26 = vor.u32 %v2251_v24, %v1992_v23  ;;  %v2283_v27 = vld [vmem:[%s2456_s11 + $0x3cc] sm:$0xf0]  ;;  %1082 = vmatpush.bf16.msra.mxu0 %v1737_v21 }
  0x33   : > { %v1720_v28 = vld [vmem:[%s2456_s11 + $0xa0] sm:$0xf]  ;;  %v2183_v29 = vld [vmem:[%s2456_s11 + $0xac] sm:$0xf0]  ;;  %v2121_v30 = vor.u32 %v2283_v27, %v2120_v25  ;;  %1096 = vmatpush.bf16.msra.mxu1 %v1865_v22 }
  0x34   : > { %v1848_v31 = vld [vmem:[%s2456_s11 + $0x1a0] sm:$0xf]  ;;  %v2215_v32 = vld [vmem:[%s2456_s11 + $0x1ac] sm:$0xf0]  ;;  %v1721_v34 = vor.u32 %v2183_v29, %v1720_v28  ;;  %1110 = vmatpush.bf16.msra.mxu2 %v1993_v26 }
  0x35   : > { %v1976_v33 = vld [vmem:[%s2456_s11 + $0x2a0] sm:$0xf]  ;;  %v2247_v35 = vld [vmem:[%s2456_s11 + $0x2ac] sm:$0xf0]  ;;  %v1849_v38 = vor.u32 %v2215_v32, %v1848_v31  ;;  %1124 = vmatpush.bf16.msra.mxu3 %v2121_v30 }
  0x36   : > { %v2104_v36 = vld [vmem:[%s2456_s11 + $0x3a0] sm:$0xf]  ;;  %v2279_v37 = vld [vmem:[%s2456_s11 + $0x3ac] sm:$0xf0]  ;;  %v1977_v39 = vor.u32 %v2247_v35, %v1976_v33  ;;  %1083 = vmatpush.bf16.msra.mxu0 %v1721_v34  ;;  %v2189_v33 = vld [vmem:[%s2456_s11 + $0xe4] sm:$0xf] }
  0x37   : > { %v1704_v40 = vld [vmem:[%s2456_s11 + $0x80] sm:$0xf]  ;;  %v2179_v41 = vld [vmem:[%s2456_s11 + $0x8c] sm:$0xf0]  ;;  %v2105_v43 = vor.u32 %v2279_v37, %v2104_v36  ;;  %1097 = vmatpush.bf16.msra.mxu1 %v1849_v38  ;;  %v1754_v34 = vld [vmem:[%s2456_s11 + $0xf0] sm:$0xf0] }
  0x38   : > { %v1832_v42 = vld [vmem:[%s2456_s11 + $0x180] sm:$0xf]  ;;  %v2211_v44 = vld [vmem:[%s2456_s11 + $0x18c] sm:$0xf0]  ;;  %v1705_v49 = vor.u32 %v2179_v41, %v1704_v40  ;;  %1111 = vmatpush.bf16.msra.mxu2 %v1977_v39  ;;  %v2221_v35 = vld [vmem:[%s2456_s11 + $0x1e4] sm:$0xf] }
  0x39   : > { %v1960_v45 = vld [vmem:[%s2456_s11 + $0x280] sm:$0xf]  ;;  %v2243_v46 = vld [vmem:[%s2456_s11 + $0x28c] sm:$0xf0]  ;;  %v1833_v50 = vor.u32 %v2211_v44, %v1832_v42  ;;  %1125 = vmatpush.bf16.msra.mxu3 %v2105_v43  ;;  %v1882_v37 = vld [vmem:[%s2456_s11 + $0x1f0] sm:$0xf0] }
  0x3a   : > { %v2088_v47 = vld [vmem:[%s2456_s11 + $0x380] sm:$0xf]  ;;  %v2275_v48 = vld [vmem:[%s2456_s11 + $0x38c] sm:$0xf0]  ;;  %v1961_v51 = vor.u32 %v2243_v46, %v1960_v45  ;;  %1084 = vmatpush.bf16.msra.mxu0 %v1705_v49  ;;  %v2253_v38 = vld [vmem:[%s2456_s11 + $0x2e4] sm:$0xf]  ;;  %v1757_v45 = vor.u32 %v2189_v33, %v1754_v34  ;;  %v1885_v46 = vor.u32 %v2221_v35, %v1882_v37 }
  0x3b   : > { %v1688_v52 = vld [vmem:[%s2456_s11 + $0x60] sm:$0xf]  ;;  %v2175_v53 = vld [vmem:[%s2456_s11 + $0x6c] sm:$0xf0]  ;;  %v2089_v55 = vor.u32 %v2275_v48, %v2088_v47  ;;  %1098 = vmatpush.bf16.msra.mxu1 %v1833_v50  ;;  %v2010_v39 = vld [vmem:[%s2456_s11 + $0x2f0] sm:$0xf0] }
  0x3c   : > { %v1816_v54 = vld [vmem:[%s2456_s11 + $0x160] sm:$0xf]  ;;  %v2207_v56 = vld [vmem:[%s2456_s11 + $0x16c] sm:$0xf0]  ;;  %v1689_v61 = vor.u32 %v2175_v53, %v1688_v52  ;;  %1112 = vmatpush.bf16.msra.mxu2 %v1961_v51  ;;  %v2285_v42 = vld [vmem:[%s2456_s11 + $0x3e4] sm:$0xf]  ;;  %v2013_v47 = vor.u32 %v2253_v38, %v2010_v39 }
  0x3d   : > { %v1944_v57 = vld [vmem:[%s2456_s11 + $0x260] sm:$0xf]  ;;  %v2239_v58 = vld [vmem:[%s2456_s11 + $0x26c] sm:$0xf0]  ;;  %v1817_v62 = vor.u32 %v2207_v56, %v1816_v54  ;;  %1126 = vmatpush.bf16.msra.mxu3 %v2089_v55  ;;  %v2138_v43 = vld [vmem:[%s2456_s11 + $0x3f0] sm:$0xf0] }
  0x3e   : > { %v2072_v59 = vld [vmem:[%s2456_s11 + $0x360] sm:$0xf]  ;;  %v2271_v60 = vld [vmem:[%s2456_s11 + $0x36c] sm:$0xf0]  ;;  %v1945_v63 = vor.u32 %v2239_v58, %v1944_v57  ;;  %1085 = vmatpush.bf16.msra.mxu0 %v1689_v61  ;;  %v2185_v48 = vld [vmem:[%s2456_s11 + $0xc4] sm:$0xf]  ;;  %v2141_v51 = vor.u32 %v2285_v42, %v2138_v43 }
  0x3f   : > { %v1672_v0 = vld [vmem:[%s2456_s11 + $0x40] sm:$0xf]  ;;  %v2171_v1 = vld [vmem:[%s2456_s11 + $0x4c] sm:$0xf0]  ;;  %v2073_v3 = vor.u32 %v2271_v60, %v2072_v59  ;;  %1099 = vmatpush.bf16.msra.mxu1 %v1817_v62  ;;  %v1738_v49 = vld [vmem:[%s2456_s11 + $0xd0] sm:$0xf0] }
  0x40   : > { %v1800_v2 = vld [vmem:[%s2456_s11 + $0x140] sm:$0xf]  ;;  %v2203_v4 = vld [vmem:[%s2456_s11 + $0x14c] sm:$0xf0]  ;;  %v1673_v9 = vor.u32 %v2171_v1, %v1672_v0  ;;  %1113 = vmatpush.bf16.msra.mxu2 %v1945_v63  ;;  %v2217_v50 = vld [vmem:[%s2456_s11 + $0x1c4] sm:$0xf]  ;;  %v1741_v57 = vor.u32 %v2185_v48, %v1738_v49 }
  0x41   : > { %v1928_v5 = vld [vmem:[%s2456_s11 + $0x240] sm:$0xf]  ;;  %v2235_v6 = vld [vmem:[%s2456_s11 + $0x24c] sm:$0xf0]  ;;  %v1801_v10 = vor.u32 %v2203_v4, %v1800_v2  ;;  %1127 = vmatpush.bf16.msra.mxu3 %v2073_v3  ;;  %v1866_v52 = vld [vmem:[%s2456_s11 + $0x1d0] sm:$0xf0] }
  0x42   : > { %v2056_v7 = vld [vmem:[%s2456_s11 + $0x340] sm:$0xf]  ;;  %v2267_v8 = vld [vmem:[%s2456_s11 + $0x34c] sm:$0xf0]  ;;  %v1929_v11 = vor.u32 %v2235_v6, %v1928_v5  ;;  %1086 = vmatpush.bf16.msra.mxu0 %v1673_v9  ;;  %v2249_v53 = vld [vmem:[%s2456_s11 + $0x2c4] sm:$0xf]  ;;  %v1869_v58 = vor.u32 %v2217_v50, %v1866_v52 }
  0x43   : > { %v1656_v12 = vld [vmem:[%s2456_s11 + $0x20] sm:$0xf]  ;;  %v2167_v13 = vld [vmem:[%s2456_s11 + $0x2c] sm:$0xf0]  ;;  %v2057_v15 = vor.u32 %v2267_v8, %v2056_v7  ;;  %1100 = vmatpush.bf16.msra.mxu1 %v1801_v10  ;;  %v1994_v54 = vld [vmem:[%s2456_s11 + $0x2d0] sm:$0xf0] }
  0x44   : > { %v1784_v14 = vld [vmem:[%s2456_s11 + $0x120] sm:$0xf]  ;;  %v2199_v16 = vld [vmem:[%s2456_s11 + $0x12c] sm:$0xf0]  ;;  %v1657_v21 = vor.u32 %v2167_v13, %v1656_v12  ;;  %1114 = vmatpush.bf16.msra.mxu2 %v1929_v11  ;;  %v2281_v55 = vld [vmem:[%s2456_s11 + $0x3c4] sm:$0xf]  ;;  %v1997_v59 = vor.u32 %v2249_v53, %v1994_v54 }
  0x45   : > { %v1912_v17 = vld [vmem:[%s2456_s11 + $0x220] sm:$0xf]  ;;  %v2231_v18 = vld [vmem:[%s2456_s11 + $0x22c] sm:$0xf0]  ;;  %v1785_v24 = vor.u32 %v2199_v16, %v1784_v14  ;;  %1128 = vmatpush.bf16.msra.mxu3 %v2057_v15  ;;  %v2122_v56 = vld [vmem:[%s2456_s11 + $0x3d0] sm:$0xf0] }
  0x46   : > { %v2040_v19 = vld [vmem:[%s2456_s11 + $0x320] sm:$0xf]  ;;  %v2263_v20 = vld [vmem:[%s2456_s11 + $0x32c] sm:$0xf0]  ;;  %v1913_v25 = vor.u32 %v2231_v18, %v1912_v17  ;;  %1087 = vmatpush.bf16.msra.mxu0 %v1657_v21  ;;  %v2181_v60 = vld [vmem:[%s2456_s11 + $0xa4] sm:$0xf]  ;;  %v2125_v63 = vor.u32 %v2281_v55, %v2122_v56 }
  0x47   : > { %v1640_v22 = vld [vmem:[%s2456_s11] sm:$0xf]  ;;  %v2163_v23 = vld [vmem:[%s2456_s11 + $0xc] sm:$0xf0]  ;;  %v2041_v29 = vor.u32 %v2263_v20, %v2040_v19  ;;  %1101 = vmatpush.bf16.msra.mxu1 %v1785_v24  ;;  %v1722_v61 = vld [vmem:[%s2456_s11 + $0xb0] sm:$0xf0] }
  0x48   : > { %v1768_v26 = vld [vmem:[%s2456_s11 + $0x100] sm:$0xf]  ;;  %v2195_v27 = vld [vmem:[%s2456_s11 + $0x10c] sm:$0xf0]  ;;  %v1641_v36 = vor.u32 %v2163_v23, %v1640_v22  ;;  %1115 = vmatpush.bf16.msra.mxu2 %v1913_v25  ;;  %v2213_v62 = vld [vmem:[%s2456_s11 + $0x1a4] sm:$0xf]  ;;  %v1725_v6 = vor.u32 %v2181_v60, %v1722_v61 }
  0x49   : > { %v1896_v28 = vld [vmem:[%s2456_s11 + $0x200] sm:$0xf]  ;;  %v2227_v30 = vld [vmem:[%s2456_s11 + $0x20c] sm:$0xf0]  ;;  %v1769_v40 = vor.u32 %v2195_v27, %v1768_v26  ;;  %1129 = vmatpush.bf16.msra.mxu3 %v2041_v29  ;;  %v1850_v0 = vld [vmem:[%s2456_s11 + $0x1b0] sm:$0xf0] }
  0x4a   : > { %v2024_v31 = vld [vmem:[%s2456_s11 + $0x300] sm:$0xf]  ;;  %v2259_v32 = vld [vmem:[%s2456_s11 + $0x30c] sm:$0xf0]  ;;  %v1897_v41 = vor.u32 %v2227_v30, %v1896_v28  ;;  %1088 = vmatpush.bf16.msra.mxu0 %v1641_v36  ;;  %v2245_v1 = vld [vmem:[%s2456_s11 + $0x2a4] sm:$0xf]  ;;  %v1853_v10 = vor.u32 %v2213_v62, %v1850_v0 }
  0x4b   : > { %v2025_v44 = vor.u32 %v2259_v32, %v2024_v31  ;;  %1102 = vmatpush.bf16.msra.mxu1 %v1769_v40  ;;  %v1978_v2 = vld [vmem:[%s2456_s11 + $0x2b0] sm:$0xf0]  ;;  %v2277_v3 = vld [vmem:[%s2456_s11 + $0x3a4] sm:$0xf]  ;;  %v1632_v8 = vld [vmem:[%s2458_s12 + $0x8] sm:$0xf] }
  0x4c   : > { %1116 = vmatpush.bf16.msra.mxu2 %v1897_v41  ;;  %v2106_v4 = vld [vmem:[%s2456_s11 + $0x3b0] sm:$0xf0]  ;;  %v2177_v5 = vld [vmem:[%s2456_s11 + $0x84] sm:$0xf]  ;;  %v2160_v9 = vld [vmem:[%s2458_s12 + $0x14] sm:$0xf0]  ;;  %v1981_v11 = vor.u32 %v2245_v1, %v1978_v2 }
  0x4d   : > { %1130 = vmatpush.bf16.msra.mxu3 %v2025_v44  ;;  %v1706_v7 = vld [vmem:[%s2456_s11 + $0x90] sm:$0xf0]  ;;  %v2209_v12 = vld [vmem:[%s2456_s11 + $0x184] sm:$0xf]  ;;  %v2554_v13 = vor.u32 %v2160_v9, %v1632_v8  ;;  %v2158_v14 = vld [vmem:[%s2458_s12 + $0xc] sm:$0xf]  ;;  %v2109_v16 = vor.u32 %v2277_v3, %v2106_v4 }
  0x4e   : > { %1137 = vmatpush.bf16.msrb.mxu0 %v1757_v45  ;;  %v1634_v15 = vld [vmem:[%s2458_s12 + $0x18] sm:$0xf0]  ;;  %v1834_v17 = vld [vmem:[%s2456_s11 + $0x190] sm:$0xf0]  ;;  %v2241_v18 = vld [vmem:[%s2456_s11 + $0x284] sm:$0xf]  ;;  %v1709_v24 = vor.u32 %v2177_v5, %v1706_v7 }
  0x4f   : > { %1151 = vmatpush.bf16.msrb.mxu1 %v1885_v46  ;;  %v1962_v19 = vld [vmem:[%s2456_s11 + $0x290] sm:$0xf0]  ;;  %v2561_v20 = vor.u32 %v2158_v14, %v1634_v15  ;;  %v2273_v21 = vld [vmem:[%s2456_s11 + $0x384] sm:$0xf]  ;;  %1117 = vmatmul.bf16.vlgmr.msra.gmra.mxu2 %v2554_v13  ;;  %v1624_v26 = vld [vmem:[%s2458_s12] sm:$0xf]  ;;  %v1837_v28 = vor.u32 %v2209_v12, %v1834_v17 }
  0x50   : > { %1165 = vmatpush.bf16.msrb.mxu2 %v2013_v47  ;;  %v2090_v22 = vld [vmem:[%s2456_s11 + $0x390] sm:$0xf0]  ;;  %v2173_v23 = vld [vmem:[%s2456_s11 + $0x64] sm:$0xf]  ;;  %v2159_v27 = vld [vmem:[%s2458_s12 + $0xc] sm:$0xf0]  ;;  %v1965_v29 = vor.u32 %v2241_v18, %v1962_v19 }
  0x51   : > { %1179 = vmatpush.bf16.msrb.mxu3 %v2141_v51  ;;  %v1690_v25 = vld [vmem:[%s2456_s11 + $0x70] sm:$0xf0]  ;;  %v2205_v30 = vld [vmem:[%s2456_s11 + $0x164] sm:$0xf]  ;;  %v2572_v31 = vor.u32 %v2159_v27, %v1624_v26  ;;  %v2093_v34 = vor.u32 %v2273_v21, %v2090_v22  ;;  %v1760_v14 = vld [vmem:[%s2456_s11 + $0xe8] sm:$0xf] }
  0x52   : > { %1138 = vmatpush.bf16.msrb.mxu0 %v1741_v57  ;;  %1131 = vmatmul.bf16.vlgmr.msra.gmra.mxu3 %v2561_v20  ;;  %v2157_v32 = vld [vmem:[%s2458_s12 + $0x4] sm:$0xf]  ;;  %v1626_v33 = vld [vmem:[%s2458_s12 + $0x10] sm:$0xf0]  ;;  %v1693_v41 = vor.u32 %v2173_v23, %v1690_v25  ;;  %v2192_v15 = vld [vmem:[%s2456_s11 + $0xf4] sm:$0xf0] }
  0x53   : > { %1152 = vmatpush.bf16.msrb.mxu1 %v1869_v58  ;;  %v1818_v35 = vld [vmem:[%s2456_s11 + $0x170] sm:$0xf0]  ;;  %v2237_v36 = vld [vmem:[%s2456_s11 + $0x264] sm:$0xf]  ;;  %v2579_v38 = vor.u32 %v2157_v32, %v1626_v33  ;;  %1089 = vmatmul.bf16.vlgmr.msra.gmra.mxu0 %v2572_v31  ;;  %v2224_v18 = vld [vmem:[%s2456_s11 + $0x1f4] sm:$0xf0]  ;;  %v1761_v27 = vor.u32 %v2192_v15, %v1760_v14 }
  0x54   : > { %1166 = vmatpush.bf16.msrb.mxu2 %v1997_v59  ;;  %v1946_v37 = vld [vmem:[%s2456_s11 + $0x270] sm:$0xf0]  ;;  %v2269_v39 = vld [vmem:[%s2456_s11 + $0x364] sm:$0xf]  ;;  %v1821_v42 = vor.u32 %v2205_v30, %v1818_v35  ;;  %v2016_v19 = vld [vmem:[%s2456_s11 + $0x2e8] sm:$0xf] }
  0x55   : > { %1180 = vmatpush.bf16.msrb.mxu3 %v2125_v63  ;;  %v2074_v40 = vld [vmem:[%s2456_s11 + $0x370] sm:$0xf0]  ;;  %1103 = vmatmul.bf16.vlgmr.msra.gmra.mxu1 %v2579_v38  ;;  %v1949_v43 = vor.u32 %v2237_v36, %v1946_v37  ;;  %v2169_v44 = vld [vmem:[%s2456_s11 + $0x44] sm:$0xf]  ;;  %v2256_v21 = vld [vmem:[%s2456_s11 + $0x2f4] sm:$0xf0] }
  0x56   : > { %1139 = vmatpush.bf16.msrb.mxu0 %v1725_v6  ;;  %v1674_v45 = vld [vmem:[%s2456_s11 + $0x50] sm:$0xf0]  ;;  %v2201_v46 = vld [vmem:[%s2456_s11 + $0x144] sm:$0xf]  ;;  %v2077_v47 = vor.u32 %v2269_v39, %v2074_v40  ;;  %v2288_v25 = vld [vmem:[%s2456_s11 + $0x3f4] sm:$0xf0] }
  0x57   : > { %1153 = vmatpush.bf16.msrb.mxu1 %v1853_v10  ;;  %v1802_v48 = vld [vmem:[%s2456_s11 + $0x150] sm:$0xf0]  ;;  %v2233_v49 = vld [vmem:[%s2456_s11 + $0x244] sm:$0xf]  ;;  %v1677_v53 = vor.u32 %v2169_v44, %v1674_v45  ;;  %v1744_v30 = vld [vmem:[%s2456_s11 + $0xc8] sm:$0xf] }
  0x58   : > { %1167 = vmatpush.bf16.msrb.mxu2 %v1981_v11  ;;  %v1930_v50 = vld [vmem:[%s2456_s11 + $0x250] sm:$0xf0]  ;;  %v2265_v51 = vld [vmem:[%s2456_s11 + $0x344] sm:$0xf]  ;;  %v1805_v54 = vor.u32 %v2201_v46, %v1802_v48  ;;  %v2188_v32 = vld [vmem:[%s2456_s11 + $0xd4] sm:$0xf0] }
  0x59   : > { %1181 = vmatpush.bf16.msrb.mxu3 %v2109_v16  ;;  %v2058_v52 = vld [vmem:[%s2456_s11 + $0x350] sm:$0xf0]  ;;  %v1933_v55 = vor.u32 %v2233_v49, %v1930_v50  ;;  %v2165_v56 = vld [vmem:[%s2456_s11 + $0x24] sm:$0xf]  ;;  %v1888_v16 = vld [vmem:[%s2456_s11 + $0x1e8] sm:$0xf] }
  0x5a   : > { %1140 = vmatpush.bf16.msrb.mxu0 %v1709_v24  ;;  %v1658_v57 = vld [vmem:[%s2456_s11 + $0x30] sm:$0xf0]  ;;  %v2197_v58 = vld [vmem:[%s2456_s11 + $0x124] sm:$0xf]  ;;  %v2061_v59 = vor.u32 %v2265_v51, %v2058_v52  ;;  %v2144_v24 = vld [vmem:[%s2456_s11 + $0x3e8] sm:$0xf] }
  0x5b   : > { %1154 = vmatpush.bf16.msrb.mxu1 %v1837_v28  ;;  %v1786_v60 = vld [vmem:[%s2456_s11 + $0x130] sm:$0xf0]  ;;  %v2229_v61 = vld [vmem:[%s2456_s11 + $0x224] sm:$0xf]  ;;  %v1661_v1 = vor.u32 %v2165_v56, %v1658_v57  ;;  %v1889_v28 = vor.u32 %v2224_v18, %v1888_v16  ;;  %v1872_v33 = vld [vmem:[%s2456_s11 + $0x1c8] sm:$0xf] }
  0x5c   : > { %1168 = vmatpush.bf16.msrb.mxu2 %v1965_v29  ;;  %v1914_v62 = vld [vmem:[%s2456_s11 + $0x230] sm:$0xf0]  ;;  %v2261_v63 = vld [vmem:[%s2456_s11 + $0x324] sm:$0xf]  ;;  %v1789_v4 = vor.u32 %v2197_v58, %v1786_v60  ;;  %v2017_v29 = vor.u32 %v2256_v21, %v2016_v19  ;;  %v2220_v35 = vld [vmem:[%s2456_s11 + $0x1d4] sm:$0xf0] }
  0x5d   : > { %1182 = vmatpush.bf16.msrb.mxu3 %v2093_v34  ;;  %v2042_v0 = vld [vmem:[%s2456_s11 + $0x330] sm:$0xf0]  ;;  %v2161_v2 = vld [vmem:[%s2456_s11 + $0x4] sm:$0xf]  ;;  %v1917_v5 = vor.u32 %v2229_v61, %v1914_v62  ;;  %v2145_v34 = vor.u32 %v2288_v25, %v2144_v24  ;;  %v2000_v36 = vld [vmem:[%s2456_s11 + $0x2c8] sm:$0xf] }
  0x5e   : > { %1141 = vmatpush.bf16.msrb.mxu0 %v1693_v41  ;;  %v1642_v3 = vld [vmem:[%s2456_s11 + $0x10] sm:$0xf0]  ;;  %v2193_v6 = vld [vmem:[%s2456_s11 + $0x104] sm:$0xf]  ;;  %v2045_v9 = vor.u32 %v2261_v63, %v2042_v0  ;;  %v2252_v37 = vld [vmem:[%s2456_s11 + $0x2d4] sm:$0xf0]  ;;  %v1745_v41 = vor.u32 %v2188_v32, %v1744_v30 }
  0x5f   : > { %1155 = vmatpush.bf16.msrb.mxu1 %v1821_v42  ;;  %v1770_v7 = vld [vmem:[%s2456_s11 + $0x110] sm:$0xf0]  ;;  %v2225_v8 = vld [vmem:[%s2456_s11 + $0x204] sm:$0xf]  ;;  %v1645_v17 = vor.u32 %v2161_v2, %v1642_v3  ;;  %v2128_v39 = vld [vmem:[%s2456_s11 + $0x3c8] sm:$0xf]  ;;  %v1873_v42 = vor.u32 %v2220_v35, %v1872_v33 }
  0x60   : > { %1169 = vmatpush.bf16.msrb.mxu2 %v1949_v43  ;;  %v1898_v10 = vld [vmem:[%s2456_s11 + $0x210] sm:$0xf0]  ;;  %v2257_v11 = vld [vmem:[%s2456_s11 + $0x304] sm:$0xf]  ;;  %v1773_v22 = vor.u32 %v2193_v6, %v1770_v7  ;;  %v2284_v40 = vld [vmem:[%s2456_s11 + $0x3d4] sm:$0xf0]  ;;  %v2001_v43 = vor.u32 %v2252_v37, %v2000_v36 }
  0x61   : > { %1183 = vmatpush.bf16.msrb.mxu3 %v2077_v47  ;;  %v2026_v12 = vld [vmem:[%s2456_s11 + $0x310] sm:$0xf0]  ;;  %v1901_v23 = vor.u32 %v2225_v8, %v1898_v10  ;;  %v1728_v44 = vld [vmem:[%s2456_s11 + $0xa8] sm:$0xf]  ;;  %v2184_v45 = vld [vmem:[%s2456_s11 + $0xb4] sm:$0xf0]  ;;  %v2129_v47 = vor.u32 %v2284_v40, %v2128_v39 }
  0x62   : > { %1142 = vmatpush.bf16.msrb.mxu0 %v1677_v53  ;;  %v2029_v26 = vor.u32 %v2257_v11, %v2026_v12  ;;  %v1856_v46 = vld [vmem:[%s2456_s11 + $0x1a8] sm:$0xf]  ;;  %v2216_v48 = vld [vmem:[%s2456_s11 + $0x1b4] sm:$0xf0]  ;;  %v1729_v53 = vor.u32 %v2184_v45, %v1728_v44 }
  0x63   : > { %1156 = vmatpush.bf16.msrb.mxu1 %v1805_v54  ;;  %v1984_v49 = vld [vmem:[%s2456_s11 + $0x2a8] sm:$0xf]  ;;  %v2248_v50 = vld [vmem:[%s2456_s11 + $0x2b4] sm:$0xf0]  ;;  %v1857_v54 = vor.u32 %v2216_v48, %v1856_v46 }
  0x64   : > { %1170 = vmatpush.bf16.msrb.mxu2 %v1933_v55  ;;  %v2112_v51 = vld [vmem:[%s2456_s11 + $0x3a8] sm:$0xf]  ;;  %v2280_v52 = vld [vmem:[%s2456_s11 + $0x3b4] sm:$0xf0]  ;;  %v1985_v55 = vor.u32 %v2248_v50, %v1984_v49 }
  0x65   : > { %1184 = vmatpush.bf16.msrb.mxu3 %v2061_v59  ;;  %v1712_v56 = vld [vmem:[%s2456_s11 + $0x88] sm:$0xf]  ;;  %v2180_v57 = vld [vmem:[%s2456_s11 + $0x94] sm:$0xf0]  ;;  %v2113_v59 = vor.u32 %v2280_v52, %v2112_v51 }
  0x66   : > { %1143 = vmatpush.bf16.msrb.mxu0 %v1661_v1  ;;  %v1840_v58 = vld [vmem:[%s2456_s11 + $0x188] sm:$0xf]  ;;  %v2212_v60 = vld [vmem:[%s2456_s11 + $0x194] sm:$0xf0]  ;;  %v1713_v1 = vor.u32 %v2180_v57, %v1712_v56  ;;  %v1890_v57 = vld [vmem:[%s2456_s11 + $0x1f8] sm:$0xf0] }
  0x67   : > { %1157 = vmatpush.bf16.msrb.mxu1 %v1789_v4  ;;  %v1968_v61 = vld [vmem:[%s2456_s11 + $0x288] sm:$0xf]  ;;  %v2244_v62 = vld [vmem:[%s2456_s11 + $0x294] sm:$0xf0]  ;;  %v1841_v2 = vor.u32 %v2212_v60, %v1840_v58  ;;  %v2254_v58 = vld [vmem:[%s2456_s11 + $0x2ec] sm:$0xf] }
  0x68   : > { %1171 = vmatpush.bf16.msrb.mxu2 %v1917_v5  ;;  %v2096_v63 = vld [vmem:[%s2456_s11 + $0x388] sm:$0xf]  ;;  %v2276_v0 = vld [vmem:[%s2456_s11 + $0x394] sm:$0xf0]  ;;  %v1969_v3 = vor.u32 %v2244_v62, %v1968_v61  ;;  %v2286_v62 = vld [vmem:[%s2456_s11 + $0x3ec] sm:$0xf] }
  0x69   : > { %1185 = vmatpush.bf16.msrb.mxu3 %v2045_v9  ;;  %v1696_v4 = vld [vmem:[%s2456_s11 + $0x68] sm:$0xf]  ;;  %v2176_v5 = vld [vmem:[%s2456_s11 + $0x74] sm:$0xf0]  ;;  %v2097_v7 = vor.u32 %v2276_v0, %v2096_v63  ;;  %v2146_v63 = vld [vmem:[%s2456_s11 + $0x3f8] sm:$0xf0] }
  0x6a   : > { %1144 = vmatpush.bf16.msrb.mxu0 %v1645_v17  ;;  %v1824_v6 = vld [vmem:[%s2456_s11 + $0x168] sm:$0xf]  ;;  %v2208_v8 = vld [vmem:[%s2456_s11 + $0x174] sm:$0xf0]  ;;  %v1697_v14 = vor.u32 %v2176_v5, %v1696_v4  ;;  %v2186_v4 = vld [vmem:[%s2456_s11 + $0xcc] sm:$0xf] }
  0x6b   : > { %1158 = vmatpush.bf16.msrb.mxu1 %v1773_v22  ;;  %v1952_v9 = vld [vmem:[%s2456_s11 + $0x268] sm:$0xf]  ;;  %v2240_v10 = vld [vmem:[%s2456_s11 + $0x274] sm:$0xf0]  ;;  %v1825_v15 = vor.u32 %v2208_v8, %v1824_v6  ;;  %v1746_v5 = vld [vmem:[%s2456_s11 + $0xd8] sm:$0xf0] }
  0x6c   : > { %1172 = vmatpush.bf16.msrb.mxu2 %v1901_v23  ;;  %v2080_v11 = vld [vmem:[%s2456_s11 + $0x368] sm:$0xf]  ;;  %v2272_v12 = vld [vmem:[%s2456_s11 + $0x374] sm:$0xf0]  ;;  %v1953_v16 = vor.u32 %v2240_v10, %v1952_v9  ;;  %v2218_v6 = vld [vmem:[%s2456_s11 + $0x1cc] sm:$0xf] }
  0x6d   : > { %1186 = vmatpush.bf16.msrb.mxu3 %v2029_v26  ;;  %1145 = vmatmul.bf16.vlgmr.msrb.gmra.mxu0 %v2572_v31  ;;  %v1680_v17 = vld [vmem:[%s2456_s11 + $0x48] sm:$0xf]  ;;  %v2172_v18 = vld [vmem:[%s2456_s11 + $0x54] sm:$0xf0]  ;;  %v2081_v21 = vor.u32 %v2272_v12, %v2080_v11  ;;  %v1874_v8 = vld [vmem:[%s2456_s11 + $0x1d8] sm:$0xf0] }
  0x6e   : > { %1193 = vmatpush.bf16.msra.mxu0 %v1761_v27  ;;  %1159 = vmatmul.bf16.vlgmr.msrb.gmra.mxu1 %v2579_v38  ;;  %v1808_v19 = vld [vmem:[%s2456_s11 + $0x148] sm:$0xf]  ;;  %v2204_v22 = vld [vmem:[%s2456_s11 + $0x154] sm:$0xf0]  ;;  %v1681_v27 = vor.u32 %v2172_v18, %v1680_v17  ;;  %v2250_v9 = vld [vmem:[%s2456_s11 + $0x2cc] sm:$0xf] }
  0x6f   : > { %1207 = vmatpush.bf16.msra.mxu1 %v1889_v28  ;;  %1173 = vmatmul.bf16.vlgmr.msrb.gmra.mxu2 %v2554_v13  ;;  %v1936_v23 = vld [vmem:[%s2456_s11 + $0x248] sm:$0xf]  ;;  %v2236_v24 = vld [vmem:[%s2456_s11 + $0x254] sm:$0xf0]  ;;  %v1809_v28 = vor.u32 %v2204_v22, %v1808_v19  ;;  %v2002_v10 = vld [vmem:[%s2456_s11 + $0x2d8] sm:$0xf0] }
  0x70   : > { %1221 = vmatpush.bf16.msra.mxu2 %v2017_v29  ;;  %1187 = vmatmul.bf16.vlgmr.msrb.gmra.mxu3 %v2561_v20  ;;  %v2064_v25 = vld [vmem:[%s2456_s11 + $0x348] sm:$0xf]  ;;  %v2268_v26 = vld [vmem:[%s2456_s11 + $0x354] sm:$0xf0]  ;;  %v1937_v29 = vor.u32 %v2236_v24, %v1936_v23  ;;  %v2282_v11 = vld [vmem:[%s2456_s11 + $0x3cc] sm:$0xf] }
  0x71   : > { %1235 = vmatpush.bf16.msra.mxu3 %v2145_v34  ;;  %v1664_v30 = vld [vmem:[%s2456_s11 + $0x28] sm:$0xf]  ;;  %v2168_v32 = vld [vmem:[%s2456_s11 + $0x34] sm:$0xf0]  ;;  %v2065_v34 = vor.u32 %v2268_v26, %v2064_v25  ;;  %v2130_v12 = vld [vmem:[%s2456_s11 + $0x3d8] sm:$0xf0] }
  0x72   : > { %1194 = vmatpush.bf16.msra.mxu0 %v1745_v41  ;;  %v1792_v33 = vld [vmem:[%s2456_s11 + $0x128] sm:$0xf]  ;;  %v2200_v35 = vld [vmem:[%s2456_s11 + $0x134] sm:$0xf0]  ;;  %v1665_v41 = vor.u32 %v2168_v32, %v1664_v30  ;;  %v2182_v17 = vld [vmem:[%s2456_s11 + $0xac] sm:$0xf] }
  0x73   : > { %1208 = vmatpush.bf16.msra.mxu1 %v1873_v42  ;;  %v1920_v36 = vld [vmem:[%s2456_s11 + $0x228] sm:$0xf]  ;;  %v2232_v37 = vld [vmem:[%s2456_s11 + $0x234] sm:$0xf0]  ;;  %v1793_v44 = vor.u32 %v2200_v35, %v1792_v33  ;;  %v1730_v18 = vld [vmem:[%s2456_s11 + $0xb8] sm:$0xf0] }
  0x74   : > { %1222 = vmatpush.bf16.msra.mxu2 %v2001_v43  ;;  %v2048_v39 = vld [vmem:[%s2456_s11 + $0x328] sm:$0xf]  ;;  %v2264_v40 = vld [vmem:[%s2456_s11 + $0x334] sm:$0xf0]  ;;  %v1921_v45 = vor.u32 %v2232_v37, %v1920_v36  ;;  %v2214_v19 = vld [vmem:[%s2456_s11 + $0x1ac] sm:$0xf] }
  0x75   : > { %1236 = vmatpush.bf16.msra.mxu3 %v2129_v47  ;;  %v1648_v42 = vld [vmem:[%s2456_s11 + $0x8] sm:$0xf]  ;;  %v2164_v43 = vld [vmem:[%s2456_s11 + $0x14] sm:$0xf0]  ;;  %v2049_v49 = vor.u32 %v2264_v40, %v2048_v39  ;;  %v1858_v22 = vld [vmem:[%s2456_s11 + $0x1b8] sm:$0xf0] }
  0x76   : > { %1195 = vmatpush.bf16.msra.mxu0 %v1729_v53  ;;  %v1776_v46 = vld [vmem:[%s2456_s11 + $0x108] sm:$0xf]  ;;  %v2196_v47 = vld [vmem:[%s2456_s11 + $0x114] sm:$0xf0]  ;;  %v2190_v53 = vld [vmem:[%s2456_s11 + $0xec] sm:$0xf]  ;;  %v1649_v56 = vor.u32 %v2164_v43, %v1648_v42 }
  0x77   : > { %1209 = vmatpush.bf16.msra.mxu1 %v1857_v54  ;;  %v1904_v48 = vld [vmem:[%s2456_s11 + $0x208] sm:$0xf]  ;;  %v2228_v50 = vld [vmem:[%s2456_s11 + $0x214] sm:$0xf0]  ;;  %v1762_v54 = vld [vmem:[%s2456_s11 + $0xf8] sm:$0xf0]  ;;  %v1777_v60 = vor.u32 %v2196_v47, %v1776_v46 }
  0x78   : > { %1223 = vmatpush.bf16.msra.mxu2 %v1985_v55  ;;  %v2032_v51 = vld [vmem:[%s2456_s11 + $0x308] sm:$0xf]  ;;  %v2260_v52 = vld [vmem:[%s2456_s11 + $0x314] sm:$0xf0]  ;;  %v2222_v55 = vld [vmem:[%s2456_s11 + $0x1ec] sm:$0xf]  ;;  %v1905_v61 = vor.u32 %v2228_v50, %v1904_v48 }
  0x79   : > { %1237 = vmatpush.bf16.msra.mxu3 %v2113_v59  ;;  %v2018_v59 = vld [vmem:[%s2456_s11 + $0x2f8] sm:$0xf0]  ;;  %v2033_v0 = vor.u32 %v2260_v52, %v2032_v51  ;;  %v2246_v23 = vld [vmem:[%s2456_s11 + $0x2ac] sm:$0xf] }
  0x7a   : > { %1196 = vmatpush.bf16.msra.mxu0 %v1713_v1  ;;  %v1765_v1 = vor.u32 %v2190_v53, %v1762_v54  ;;  %v1986_v24 = vld [vmem:[%s2456_s11 + $0x2b8] sm:$0xf0]  ;;  %v2278_v25 = vld [vmem:[%s2456_s11 + $0x3ac] sm:$0xf] }
  0x7b   : > { %1210 = vmatpush.bf16.msra.mxu1 %v1841_v2  ;;  %v1893_v2 = vor.u32 %v2222_v55, %v1890_v57  ;;  %v2114_v26 = vld [vmem:[%s2456_s11 + $0x3b8] sm:$0xf0]  ;;  %v2178_v30 = vld [vmem:[%s2456_s11 + $0x8c] sm:$0xf] }
  0x7c   : > { %1224 = vmatpush.bf16.msra.mxu2 %v1969_v3  ;;  %v2021_v3 = vor.u32 %v2254_v58, %v2018_v59  ;;  %v1714_v32 = vld [vmem:[%s2456_s11 + $0x98] sm:$0xf0]  ;;  %v2210_v33 = vld [vmem:[%s2456_s11 + $0x18c] sm:$0xf] }
  0x7d   : > { %1238 = vmatpush.bf16.msra.mxu3 %v2097_v7  ;;  %v2149_v7 = vor.u32 %v2286_v62, %v2146_v63  ;;  %v1842_v35 = vld [vmem:[%s2456_s11 + $0x198] sm:$0xf0]  ;;  %v2242_v36 = vld [vmem:[%s2456_s11 + $0x28c] sm:$0xf] }
  0x7e   : > { %1197 = vmatpush.bf16.msra.mxu0 %v1697_v14  ;;  %v1749_v14 = vor.u32 %v2186_v4, %v1746_v5  ;;  %v1970_v37 = vld [vmem:[%s2456_s11 + $0x298] sm:$0xf0]  ;;  %v2274_v39 = vld [vmem:[%s2456_s11 + $0x38c] sm:$0xf]  ;;  %v1845_v42 = vor.u32 %v2210_v33, %v1842_v35 }
  0x7f   : > { %1211 = vmatpush.bf16.msra.mxu1 %v1825_v15  ;;  %v1877_v15 = vor.u32 %v2218_v6, %v1874_v8  ;;  %v2098_v40 = vld [vmem:[%s2456_s11 + $0x398] sm:$0xf0]  ;;  %v1973_v43 = vor.u32 %v2242_v36, %v1970_v37  ;;  %v2206_v46 = vld [vmem:[%s2456_s11 + $0x16c] sm:$0xf] }
  0x80   : > { %1225 = vmatpush.bf16.msra.mxu2 %v1953_v16  ;;  %v2005_v16 = vor.u32 %v2250_v9, %v2002_v10  ;;  %v2101_v47 = vor.u32 %v2274_v39, %v2098_v40  ;;  %v1826_v48 = vld [vmem:[%s2456_s11 + $0x178] sm:$0xf0]  ;;  %v2270_v51 = vld [vmem:[%s2456_s11 + $0x36c] sm:$0xf]  ;;  %v281_v39 = vld [vmem:[#allocation2 + $0x30] sm:$0xff] }
  0x81   : > { %1239 = vmatpush.bf16.msra.mxu3 %v2081_v21  ;;  %v2133_v21 = vor.u32 %v2282_v11, %v2130_v12  ;;  %v1954_v50 = vld [vmem:[%s2456_s11 + $0x278] sm:$0xf0]  ;;  %v1829_v54 = vor.u32 %v2206_v46, %v1826_v48  ;;  %v2202_v58 = vld [vmem:[%s2456_s11 + $0x14c] sm:$0xf] }
  0x82   : > { %1198 = vmatpush.bf16.msra.mxu0 %v1681_v27  ;;  %v1733_v27 = vor.u32 %v2182_v17, %v1730_v18  ;;  %v2082_v52 = vld [vmem:[%s2456_s11 + $0x378] sm:$0xf0]  ;;  %v2266_v63 = vld [vmem:[%s2456_s11 + $0x34c] sm:$0xf] }
  0x83   : > { %1212 = vmatpush.bf16.msra.mxu1 %v1809_v28  ;;  %v1861_v28 = vor.u32 %v2214_v19, %v1858_v22  ;;  %v1682_v57 = vld [vmem:[%s2456_s11 + $0x58] sm:$0xf0]  ;;  %v2085_v59 = vor.u32 %v2270_v51, %v2082_v52  ;;  %v2166_v4 = vld [vmem:[%s2456_s11 + $0x2c] sm:$0xf] }
  0x84   : > { %1226 = vmatpush.bf16.msra.mxu2 %v1937_v29  ;;  %v1989_v29 = vor.u32 %v2246_v23, %v1986_v24  ;;  %v1938_v62 = vld [vmem:[%s2456_s11 + $0x258] sm:$0xf0]  ;;  %v2198_v6 = vld [vmem:[%s2456_s11 + $0x12c] sm:$0xf] }
  0x85   : > { %1240 = vmatpush.bf16.msra.mxu3 %v2065_v34  ;;  %v2117_v34 = vor.u32 %v2278_v25, %v2114_v26  ;;  %v1666_v5 = vld [vmem:[%s2456_s11 + $0x38] sm:$0xf0]  ;;  %v2230_v9 = vld [vmem:[%s2456_s11 + $0x22c] sm:$0xf] }
  0x86   : > { %1199 = vmatpush.bf16.msra.mxu0 %v1665_v41  ;;  %v1717_v41 = vor.u32 %v2178_v30, %v1714_v32  ;;  %v1794_v8 = vld [vmem:[%s2456_s11 + $0x138] sm:$0xf0]  ;;  %v2262_v11 = vld [vmem:[%s2456_s11 + $0x32c] sm:$0xf] }
  0x87   : > { %1213 = vmatpush.bf16.msra.mxu1 %v1793_v44  ;;  %v2174_v44 = vld [vmem:[%s2456_s11 + $0x6c] sm:$0xf]  ;;  %v1922_v10 = vld [vmem:[%s2456_s11 + $0x238] sm:$0xf0] }
  0x88   : > { %1227 = vmatpush.bf16.msra.mxu2 %v1921_v45  ;;  %v1698_v45 = vld [vmem:[%s2456_s11 + $0x78] sm:$0xf0]  ;;  %v2162_v17 = vld [vmem:[%s2456_s11 + $0xc] sm:$0xf] }
  0x89   : > { %1241 = vmatpush.bf16.msra.mxu3 %v2049_v49  ;;  %v2238_v49 = vld [vmem:[%s2456_s11 + $0x26c] sm:$0xf]  ;;  %v1701_v53 = vor.u32 %v2174_v44, %v1698_v45  ;;  %v2050_v12 = vld [vmem:[%s2456_s11 + $0x338] sm:$0xf0] }
  0x8a   : > { %1200 = vmatpush.bf16.msra.mxu0 %v1649_v56  ;;  %v1957_v55 = vor.u32 %v2238_v49, %v1954_v50  ;;  %v2170_v56 = vld [vmem:[%s2456_s11 + $0x4c] sm:$0xf]  ;;  %v1650_v18 = vld [vmem:[%s2456_s11 + $0x18] sm:$0xf0] }
  0x8b   : > { %1214 = vmatpush.bf16.msra.mxu1 %v1777_v60  ;;  %v1810_v60 = vld [vmem:[%s2456_s11 + $0x158] sm:$0xf0]  ;;  %v2194_v19 = vld [vmem:[%s2456_s11 + $0x10c] sm:$0xf] }
  0x8c   : > { %1228 = vmatpush.bf16.msra.mxu2 %v1905_v61  ;;  %v2234_v61 = vld [vmem:[%s2456_s11 + $0x24c] sm:$0xf]  ;;  %v1778_v22 = vld [vmem:[%s2456_s11 + $0x118] sm:$0xf0] }
  0x8d   : > { %1242 = vmatpush.bf16.msra.mxu3 %v2033_v0  ;;  %1201 = vmatmul.bf16.vlgmr.msra.gmra.mxu0 %v2572_v31  ;;  %v2066_v0 = vld [vmem:[%s2456_s11 + $0x358] sm:$0xf0]  ;;  %v2226_v23 = vld [vmem:[%s2456_s11 + $0x20c] sm:$0xf] }
  0x8e   : > { %1249 = vmatpush.bf16.msrb.mxu0 %v1765_v1  ;;  %1215 = vmatmul.bf16.vlgmr.msra.gmra.mxu1 %v2579_v38  ;;  %v1685_v1 = vor.u32 %v2170_v56, %v1682_v57  ;;  %v1906_v24 = vld [vmem:[%s2456_s11 + $0x218] sm:$0xf0]  ;;  %v2258_v25 = vld [vmem:[%s2456_s11 + $0x30c] sm:$0xf] }
  0x8f   : > { %1263 = vmatpush.bf16.msrb.mxu1 %v1893_v2  ;;  %1229 = vmatmul.bf16.vlgmr.msra.gmra.mxu2 %v2554_v13  ;;  %v1813_v2 = vor.u32 %v2202_v58, %v1810_v60  ;;  %v2034_v26 = vld [vmem:[%s2456_s11 + $0x318] sm:$0xf0]  ;;  %v285_v46 = vld [vmem:[#allocation2 + $0x8] sm:$0xff] }
  0x90   : > { %1277 = vmatpush.bf16.msrb.mxu2 %v2021_v3  ;;  %1243 = vmatmul.bf16.vlgmr.msra.gmra.mxu3 %v2561_v20  ;;  %v1941_v3 = vor.u32 %v2234_v61, %v1938_v62  ;;  %v2037_v30 = vor.u32 %v2258_v25, %v2034_v26  ;;  %v286_v62 = vld [vmem:[#allocation2 + $0x20] sm:$0xff] }
  0x91   : > { %1291 = vmatpush.bf16.msrb.mxu3 %v2149_v7  ;;  %v2069_v7 = vor.u32 %v2266_v63, %v2066_v0 }
  0x92   : > { %1250 = vmatpush.bf16.msrb.mxu0 %v1749_v14  ;;  %v1669_v14 = vor.u32 %v2166_v4, %v1666_v5 }
  0x93   : > { %1264 = vmatpush.bf16.msrb.mxu1 %v1877_v15  ;;  %v1797_v15 = vor.u32 %v2198_v6, %v1794_v8 }
  0x94   : > { %1278 = vmatpush.bf16.msrb.mxu2 %v2005_v16  ;;  %v1925_v16 = vor.u32 %v2230_v9, %v1922_v10 }
  0x95   : > { %1292 = vmatpush.bf16.msrb.mxu3 %v2133_v21  ;;  %v2053_v21 = vor.u32 %v2262_v11, %v2050_v12 }
  0x96   : > { %1251 = vmatpush.bf16.msrb.mxu0 %v1733_v27  ;;  %v1653_v27 = vor.u32 %v2162_v17, %v1650_v18  ;;  %v287_v17 = vld [vmem:[#allocation2 + $0x28] sm:$0xff] }
  0x97   : > { %1265 = vmatpush.bf16.msrb.mxu1 %v1861_v28  ;;  %v1781_v28 = vor.u32 %v2194_v19, %v1778_v22 }
  0x98   : > { %1279 = vmatpush.bf16.msrb.mxu2 %v1989_v29  ;;  %v1909_v29 = vor.u32 %v2226_v23, %v1906_v24 }
  0x99   : > { %1293 = vmatpush.bf16.msrb.mxu3 %v2117_v34 }
  0x9a   : > { %1252 = vmatpush.bf16.msrb.mxu0 %v1717_v41 }
  0x9b   : > { %1266 = vmatpush.bf16.msrb.mxu1 %v1845_v42 }
  0x9c   : > { %1280 = vmatpush.bf16.msrb.mxu2 %v1973_v43 }
  0x9d   : > { %1294 = vmatpush.bf16.msrb.mxu3 %v2101_v47 }
  0x9e   : > { %1253 = vmatpush.bf16.msrb.mxu0 %v1701_v53  ;;  %v282_v53 = vld [vmem:[#allocation2] sm:$0xff] }
  0x9f   : > { %1267 = vmatpush.bf16.msrb.mxu1 %v1829_v54 }
  0xa0   : > { %1281 = vmatpush.bf16.msrb.mxu2 %v1957_v55 }
  0xa1   : > { %1295 = vmatpush.bf16.msrb.mxu3 %v2085_v59 }
  0xa2   : > { %1254 = vmatpush.bf16.msrb.mxu0 %v1685_v1 }
  0xa3   : > { %1268 = vmatpush.bf16.msrb.mxu1 %v1813_v2 }
  0xa4   : > { %1282 = vmatpush.bf16.msrb.mxu2 %v1941_v3 }
  0xa5   : > { %1296 = vmatpush.bf16.msrb.mxu3 %v2069_v7  ;;  %v283_v7 = vld [vmem:[#allocation2 + $0x18] sm:$0xff] }
  0xa6   : > { %1255 = vmatpush.bf16.msrb.mxu0 %v1669_v14 }
  0xa7   : > { %1269 = vmatpush.bf16.msrb.mxu1 %v1797_v15 }
  0xa8   : > { %1283 = vmatpush.bf16.msrb.mxu2 %v1925_v16 }
  0xa9   : > { %1297 = vmatpush.bf16.msrb.mxu3 %v2053_v21 }
  0xaa   : > { %1256 = vmatpush.bf16.msrb.mxu0 %v1653_v27  ;;  %v284_v27 = vld [vmem:[#allocation2 + $0x10] sm:$0xff] }
  0xab   : > { %1270 = vmatpush.bf16.msrb.mxu1 %v1781_v28 }
  0xac   : > { %1284 = vmatpush.bf16.msrb.mxu2 %v1909_v29 }
  0xad   : > { %1298 = vmatpush.bf16.msrb.mxu3 %v2037_v30  ;;  %1257 = vmatmul.bf16.vlgmr.msrb.gmra.mxu0 %v2572_v31 }
  0xae   : > { %1271 = vmatmul.bf16.vlgmr.msrb.gmra.mxu1 %v2579_v38 }
  0xaf   : > { %1285 = vmatmul.bf16.vlgmr.msrb.gmra.mxu2 %v2554_v13 }
  0xb0   : > { %1299 = vmatmul.bf16.vlgmr.msrb.gmra.mxu3 %v2561_v20 }
  0xd0   : > { %v1090_v32 = vpop.f32.mrf.mxu0 }
  0xd2   : > { %v1104_v33 = vpop.f32.mrf.mxu1  ;;  %v1118_v35 = vpop.f32.mrf.mxu2 }
  0xd3   : > { %v1105_v34 = vadd.f32 %v1104_v33, %v1090_v32 }
  0xd5   : > { %v1132_v36 = vpop.f32.mrf.mxu3  ;;  %v1119_v37 = vadd.f32 %v1118_v35, %v1105_v34 }
  0xd7   : > { %v1133_v40 = vadd.f32 %v1132_v36, %v1119_v37  ;;  %v288_v36 = vld [vmem:[#allocation2 + $0x38] sm:$0xff] }
  0xd8   : > { %v1092_v42 = vpop.f32.mrf.mxu0 }
  0xd9   : > { %v1305_v41 = vadd.f32 %v1133_v40, %v281_v39 }
  0xda   : > { %v1106_v43 = vpop.f32.mrf.mxu1  ;;  %v1120_v31 = vpop.f32.mrf.mxu2 }
  0xdb   : > { %1313 = vst [vmem:[#allocation2 + $0x30] sm:$0xff] %v1305_v41  ;;  %v1107_v44 = vadd.f32 %v1106_v43, %v1092_v42 }
  0xdd   : > { %v1134_v45 = vpop.f32.mrf.mxu3  ;;  %v1121_v38 = vadd.f32 %v1120_v31, %v1107_v44 }
  0xdf   : > { %v1135_v13 = vadd.f32 %v1134_v45, %v1121_v38 }
  0xe1   : > { %v1309_v47 = vadd.f32 %v1135_v13, %v285_v46 }
  0xe3   : > { %1317 = vst [vmem:[#allocation2 + $0x8] sm:$0xff] %v1309_v47 }
  0xea   : > { %v1146_v20 = vpop.f32.mrf.mxu0 }
  0xeb   : > { %v1160_v48 = vpop.f32.mrf.mxu1 }
  0xec   : > { %v1161_v49 = vadd.f32 %v1160_v48, %v1146_v20 }
  0xf2   : > { %v1174_v50 = vpop.f32.mrf.mxu2  ;;  %v1148_v55 = vpop.f32.mrf.mxu0 }
  0xf3   : > { %v1175_v51 = vadd.f32 %v1174_v50, %v1161_v49  ;;  %v1188_v52 = vpop.f32.mrf.mxu3  ;;  %v1162_v56 = vpop.f32.mrf.mxu1 }
  0xf4   : > { %v1163_v58 = vadd.f32 %v1162_v56, %v1148_v55 }
  0xf5   : > { %v1189_v54 = vadd.f32 %v1188_v52, %v1175_v51 }
  0xf7   : > { %v1306_v57 = vadd.f32 %v1189_v54, %v282_v53 }
  0xf9   : > { %1314 = vst [vmem:[#allocation2] sm:$0xff] %v1306_v57 }
  0xfa   : > { %v1176_v59 = vpop.f32.mrf.mxu2 }
  0xfb   : > { %v1177_v60 = vadd.f32 %v1176_v59, %v1163_v58  ;;  %v1190_v61 = vpop.f32.mrf.mxu3 }
  0xfd   : > { %v1191_v63 = vadd.f32 %v1190_v61, %v1177_v60 }
  0xff   : > { %v1310_v0 = vadd.f32 %v1191_v63, %v286_v62 }
 0x101   : > { %1318 = vst [vmem:[#allocation2 + $0x20] sm:$0xff] %v1310_v0 }
 0x10a   : > { %v1202_v1 = vpop.f32.mrf.mxu0 }
 0x10b   : > { %v1216_v2 = vpop.f32.mrf.mxu1 }
 0x10c   : > { %v1217_v3 = vadd.f32 %v1216_v2, %v1202_v1 }
 0x112   : > { %v1230_v4 = vpop.f32.mrf.mxu2  ;;  %v1204_v9 = vpop.f32.mrf.mxu0 }
 0x113   : > { %v1231_v5 = vadd.f32 %v1230_v4, %v1217_v3  ;;  %v1244_v6 = vpop.f32.mrf.mxu3  ;;  %v1218_v10 = vpop.f32.mrf.mxu1 }
 0x114   : > { %v1219_v12 = vadd.f32 %v1218_v10, %v1204_v9 }
 0x115   : > { %v1245_v8 = vadd.f32 %v1244_v6, %v1231_v5 }
 0x117   : > { %v1307_v11 = vadd.f32 %v1245_v8, %v283_v7 }
 0x119   : > { %1315 = vst [vmem:[#allocation2 + $0x18] sm:$0xff] %v1307_v11 }
 0x11a   : > { %v1232_v14 = vpop.f32.mrf.mxu2 }
 0x11b   : > { %v1233_v15 = vadd.f32 %v1232_v14, %v1219_v12  ;;  %v1246_v16 = vpop.f32.mrf.mxu3 }
 0x11d   : > { %v1247_v18 = vadd.f32 %v1246_v16, %v1233_v15 }
 0x11f   : > { %v1311_v19 = vadd.f32 %v1247_v18, %v287_v17 }
 0x121   : > { %1319 = vst [vmem:[#allocation2 + $0x28] sm:$0xff] %v1311_v19 }
 0x12a   : > { %v1258_v21 = vpop.f32.mrf.mxu0 }
 0x12b   : > { %v1272_v22 = vpop.f32.mrf.mxu1 }
 0x12c   : > { %v1273_v23 = vadd.f32 %v1272_v22, %v1258_v21 }
 0x132   : > { %v1286_v24 = vpop.f32.mrf.mxu2  ;;  %v1260_v29 = vpop.f32.mrf.mxu0 }
 0x133   : > { %v1287_v25 = vadd.f32 %v1286_v24, %v1273_v23  ;;  %v1300_v26 = vpop.f32.mrf.mxu3  ;;  %v1274_v30 = vpop.f32.mrf.mxu1 }
 0x134   : > { %v1275_v33 = vadd.f32 %v1274_v30, %v1260_v29 }
 0x135   : > { %v1301_v28 = vadd.f32 %v1300_v26, %v1287_v25 }
 0x137   : > { %v1308_v32 = vadd.f32 %v1301_v28, %v284_v27 }
 0x139   : > { %1316 = vst [vmem:[#allocation2 + $0x10] sm:$0xff] %v1308_v32 }
 0x13a   : > { %v1288_v34 = vpop.f32.mrf.mxu2 }
 0x13b   : > { %v1289_v35 = vadd.f32 %v1288_v34, %v1275_v33  ;;  %v1302_v37 = vpop.f32.mrf.mxu3 }
 0x13d   : > { %v1303_v39 = vadd.f32 %v1302_v37, %v1289_v35  ;;  %1324 = sbr.rel (%p2150_p11) target bundleno = 872 (0x368), region = 67 }
 0x13f   : > { %v1312_v40 = vadd.f32 %v1303_v39, %v288_v36 }
 0x141   : > { %1320 = vst [vmem:[#allocation2 + $0x38] sm:$0xff] %v1312_v40 }
 0x142   : > { %v1382_v41 = vld [vmem:[%s2971_s2 + $0x178] sm:$0xff]  ;;  %v1381_v43 = vld [vmem:[%s2971_s2 + $0x170] sm:$0xff]  ;;  %v1380_v38 = vld [vmem:[%s2971_s2 + $0x168] sm:$0xff] }
 0x143   : > { %v1350_v42 = vld [vmem:[%s2971_s2 + $0x78] sm:$0xff]  ;;  %1446 = vmatpush.msra.mxu2 %v1382_v41  ;;  %v1349_v31 = vld [vmem:[%s2971_s2 + $0x70] sm:$0xff]  ;;  %v1348_v13 = vld [vmem:[%s2971_s2 + $0x68] sm:$0xff] }
 0x144   : > { %1400 = vmatpush.msra.mxu0 %v1350_v42  ;;  %v1398_v44 = vld [vmem:[%s2971_s2 + $0x1f8] sm:$0xff]  ;;  %v1397_v46 = vld [vmem:[%s2971_s2 + $0x1f0] sm:$0xff]  ;;  %v1396_v20 = vld [vmem:[%s2971_s2 + $0x1e8] sm:$0xff] }
 0x145   : > { %v1366_v45 = vld [vmem:[%s2971_s2 + $0xf8] sm:$0xff]  ;;  %1469 = vmatpush.msra.mxu3 %v1398_v44  ;;  %1447 = vmatpush.msra.mxu2 %v1381_v43  ;;  %v1365_v47 = vld [vmem:[%s2971_s2 + $0xf0] sm:$0xff]  ;;  %v1379_v48 = vld [vmem:[%s2971_s2 + $0x160] sm:$0xff] }
 0x146   : > { %1423 = vmatpush.msra.mxu1 %v1366_v45  ;;  %1401 = vmatpush.msra.mxu0 %v1349_v31  ;;  %v1347_v49 = vld [vmem:[%s2971_s2 + $0x60] sm:$0xff]  ;;  %v1364_v50 = vld [vmem:[%s2971_s2 + $0xe8] sm:$0xff]  ;;  %v1378_v53 = vld [vmem:[%s2971_s2 + $0x158] sm:$0xff] }
 0x147   : > { %1470 = vmatpush.msra.mxu3 %v1397_v46  ;;  %1448 = vmatpush.msra.mxu2 %v1380_v38  ;;  %v1395_v51 = vld [vmem:[%s2971_s2 + $0x1e0] sm:$0xff]  ;;  %v1346_v54 = vld [vmem:[%s2971_s2 + $0x58] sm:$0xff]  ;;  %v1377_v57 = vld [vmem:[%s2971_s2 + $0x150] sm:$0xff] }
 0x148   : > { %1424 = vmatpush.msra.mxu1 %v1365_v47  ;;  %1402 = vmatpush.msra.mxu0 %v1348_v13  ;;  %v1363_v52 = vld [vmem:[%s2971_s2 + $0xe0] sm:$0xff]  ;;  %v1394_v55 = vld [vmem:[%s2971_s2 + $0x1d8] sm:$0xff]  ;;  %v1345_v58 = vld [vmem:[%s2971_s2 + $0x50] sm:$0xff]  ;;  %v1492_v47 = vlaneseq }
 0x149   : > { %1471 = vmatpush.msra.mxu3 %v1396_v20  ;;  %1449 = vmatpush.msra.mxu2 %v1379_v48  ;;  %v1362_v56 = vld [vmem:[%s2971_s2 + $0xd8] sm:$0xff]  ;;  %v1393_v59 = vld [vmem:[%s2971_s2 + $0x1d0] sm:$0xff]  ;;  %v1376_v61 = vld [vmem:[%s2971_s2 + $0x148] sm:$0xff] }
 0x14a   : > { %1425 = vmatpush.msra.mxu1 %v1364_v50  ;;  %1403 = vmatpush.msra.mxu0 %v1347_v49  ;;  %v1361_v60 = vld [vmem:[%s2971_s2 + $0xd0] sm:$0xff]  ;;  %v1344_v62 = vld [vmem:[%s2971_s2 + $0x48] sm:$0xff]  ;;  %v1375_v1 = vld [vmem:[%s2971_s2 + $0x140] sm:$0xff] }
 0x14b   : > { %1472 = vmatpush.msra.mxu3 %v1395_v51  ;;  %1450 = vmatpush.msra.mxu2 %v1378_v53  ;;  %v1392_v63 = vld [vmem:[%s2971_s2 + $0x1c8] sm:$0xff]  ;;  %v1343_v2 = vld [vmem:[%s2971_s2 + $0x40] sm:$0xff]  ;;  %v1374_v5 = vld [vmem:[%s2971_s2 + $0x138] sm:$0xff]  ;;  %v1493_v51 = vand.u32 127, %v1492_v47 }
 0x14c   : > { %1426 = vmatpush.msra.mxu1 %v1363_v52  ;;  %1404 = vmatpush.msra.mxu0 %v1346_v54  ;;  %v1360_v0 = vld [vmem:[%s2971_s2 + $0xc8] sm:$0xff]  ;;  %v1391_v3 = vld [vmem:[%s2971_s2 + $0x1c0] sm:$0xff]  ;;  %v1342_v6 = vld [vmem:[%s2971_s2 + $0x38] sm:$0xff] }
 0x14d   : > { %1473 = vmatpush.msra.mxu3 %v1394_v55  ;;  %1451 = vmatpush.msra.mxu2 %v1377_v57  ;;  %v1359_v4 = vld [vmem:[%s2971_s2 + $0xc0] sm:$0xff]  ;;  %v1390_v7 = vld [vmem:[%s2971_s2 + $0x1b8] sm:$0xff]  ;;  %v1373_v9 = vld [vmem:[%s2971_s2 + $0x130] sm:$0xff]  ;;  %vm1494_vm0 = vcmp.lt.s32.totalorder %v1493_v51, 31  ;;  %vm1522_vm1 = vcmp.eq.s32.totalorder %v1493_v51, 40 }
 0x14e   : > { %1427 = vmatpush.msra.mxu1 %v1362_v56  ;;  %1405 = vmatpush.msra.mxu0 %v1345_v58  ;;  %v1358_v8 = vld [vmem:[%s2971_s2 + $0xb8] sm:$0xff]  ;;  %v1341_v10 = vld [vmem:[%s2971_s2 + $0x30] sm:$0xff]  ;;  %v1372_v14 = vld [vmem:[%s2971_s2 + $0x128] sm:$0xff] }
 0x14f   : > { %1474 = vmatpush.msra.mxu3 %v1393_v59  ;;  %1452 = vmatpush.msra.mxu2 %v1376_v61  ;;  %v1389_v11 = vld [vmem:[%s2971_s2 + $0x1b0] sm:$0xff]  ;;  %v1340_v15 = vld [vmem:[%s2971_s2 + $0x28] sm:$0xff]  ;;  %v1371_v18 = vld [vmem:[%s2971_s2 + $0x120] sm:$0xff] }
 0x150   : > { %1428 = vmatpush.msra.mxu1 %v1361_v60  ;;  %1406 = vmatpush.msra.mxu0 %v1344_v62  ;;  %v1357_v12 = vld [vmem:[%s2971_s2 + $0xb0] sm:$0xff]  ;;  %v1388_v16 = vld [vmem:[%s2971_s2 + $0x1a8] sm:$0xff]  ;;  %v1339_v19 = vld [vmem:[%s2971_s2 + $0x20] sm:$0xff] }
 0x151   : > { %1475 = vmatpush.msra.mxu3 %v1392_v63  ;;  %1453 = vmatpush.msra.mxu2 %v1375_v1  ;;  %v1356_v17 = vld [vmem:[%s2971_s2 + $0xa8] sm:$0xff]  ;;  %v1387_v21 = vld [vmem:[%s2971_s2 + $0x1a0] sm:$0xff]  ;;  %v1370_v23 = vld [vmem:[%s2971_s2 + $0x118] sm:$0xff] }
 0x152   : > { %1429 = vmatpush.msra.mxu1 %v1360_v0  ;;  %1407 = vmatpush.msra.mxu0 %v1343_v2  ;;  %v1355_v22 = vld [vmem:[%s2971_s2 + $0xa0] sm:$0xff]  ;;  %v1338_v24 = vld [vmem:[%s2971_s2 + $0x18] sm:$0xff]  ;;  %v1369_v25 = vld [vmem:[%s2971_s2 + $0x110] sm:$0xff] }
 0x153   : > { %1476 = vmatpush.msra.mxu3 %v1391_v3  ;;  %1454 = vmatpush.msra.mxu2 %v1374_v5  ;;  %v1386_v26 = vld [vmem:[%s2971_s2 + $0x198] sm:$0xff]  ;;  %v1337_v28 = vld [vmem:[%s2971_s2 + $0x10] sm:$0xff]  ;;  %v1368_v32 = vld [vmem:[%s2971_s2 + $0x108] sm:$0xff] }
 0x154   : > { %1430 = vmatpush.msra.mxu1 %v1359_v4  ;;  %1408 = vmatpush.msra.mxu0 %v1342_v6  ;;  %v1354_v27 = vld [vmem:[%s2971_s2 + $0x98] sm:$0xff]  ;;  %v1385_v29 = vld [vmem:[%s2971_s2 + $0x190] sm:$0xff]  ;;  %v1336_v33 = vld [vmem:[%s2971_s2 + $0x8] sm:$0xff] }
 0x155   : > { %1477 = vmatpush.msra.mxu3 %v1390_v7  ;;  %1455 = vmatpush.msra.mxu2 %v1373_v9  ;;  %v1353_v30 = vld [vmem:[%s2971_s2 + $0x90] sm:$0xff]  ;;  %v1384_v34 = vld [vmem:[%s2971_s2 + $0x188] sm:$0xff]  ;;  %v1367_v36 = vld [vmem:[%s2971_s2 + $0x100] sm:$0xff] }
 0x156   : > { %1431 = vmatpush.msra.mxu1 %v1358_v8  ;;  %1409 = vmatpush.msra.mxu0 %v1341_v10  ;;  %v1352_v35 = vld [vmem:[%s2971_s2 + $0x88] sm:$0xff]  ;;  %v1335_v37 = vld [vmem:[%s2971_s2] sm:$0xff]  ;;  %v1327_v39 = vld [vmem:[#allocation2 + $0x18] sm:$0xff] }
 0x157   : > { %1478 = vmatpush.msra.mxu3 %v1389_v11  ;;  %1456 = vmatpush.msra.mxu2 %v1372_v14  ;;  %v1383_v40 = vld [vmem:[%s2971_s2 + $0x180] sm:$0xff]  ;;  %v1325_v41 = vld [vmem:[#allocation2 + $0x30] sm:$0xff]  ;;  %v1331_v31 = vld [vmem:[#allocation2 + $0x28] sm:$0xff] }
 0x158   : > { %1432 = vmatpush.msra.mxu1 %v1357_v12  ;;  %1410 = vmatpush.msra.mxu0 %v1340_v15  ;;  %v1328_v42 = vld [vmem:[#allocation2 + $0x10] sm:$0xff]  ;;  %v1351_v43 = vld [vmem:[%s2971_s2 + $0x80] sm:$0xff]  ;;  %v1329_v45 = vld [vmem:[#allocation2 + $0x8] sm:$0xff] }
 0x159   : > { %1479 = vmatpush.msra.mxu3 %v1388_v16  ;;  %1457 = vmatpush.msra.mxu2 %v1371_v18  ;;  %v1326_v44 = vld [vmem:[#allocation2] sm:$0xff]  ;;  %v1332_v38 = vld [vmem:[#allocation2 + $0x38] sm:$0xff] }
 0x15a   : > { %1433 = vmatpush.msra.mxu1 %v1356_v17  ;;  %1411 = vmatpush.msra.mxu0 %v1339_v19  ;;  %v1330_v46 = vld [vmem:[#allocation2 + $0x20] sm:$0xff] }
 0x15b   : > { %1480 = vmatpush.msra.mxu3 %v1387_v21  ;;  %1458 = vmatpush.msra.mxu2 %v1370_v23  ;;  %v2330_v13 = vld [vmem:[%s2972_s3] ss:$0 sm:$0xff]  ;;  %v2331_v11 = vld [vmem:[%s2972_s3 + $0x1] ss:$0 sm:$0xff] }
 0x15c   : > { %1434 = vmatpush.msra.mxu1 %v1355_v22  ;;  %1412 = vmatpush.msra.mxu0 %v1338_v24 }
 0x15d   : > { %1481 = vmatpush.msra.mxu3 %v1386_v26  ;;  %1459 = vmatpush.msra.mxu2 %v1369_v25 }
 0x15e   : > { %1435 = vmatpush.msra.mxu1 %v1354_v27  ;;  %1413 = vmatpush.msra.mxu0 %v1337_v28 }
 0x15f   : > { %1482 = vmatpush.msra.mxu3 %v1385_v29  ;;  %1460 = vmatpush.msra.mxu2 %v1368_v32 }
 0x160   : > { %1436 = vmatpush.msra.mxu1 %v1353_v30  ;;  %1414 = vmatpush.msra.mxu0 %v1336_v33 }
 0x161   : > { %1483 = vmatpush.msra.mxu3 %v1384_v34  ;;  %1461 = vmatpush.msra.mxu2 %v1367_v36 }
 0x162   : > { %1437 = vmatpush.msra.mxu1 %v1352_v35  ;;  %1415 = vmatpush.msra.mxu0 %v1335_v37 }
 0x163   : > { %1462 = vmatmul.f32.vlgmr.msra.gmra.mxu2 %v1327_v39  ;;  %1484 = vmatpush.msra.mxu3 %v1383_v40 }
 0x164   : > { %1416 = vmatmul.f32.vlgmr.msra.gmra.mxu0 %v1325_v41  ;;  %1485 = vmatmul.f32.vlgmr.msra.gmra.mxu3 %v1328_v42 }
 0x165   : > { %1438 = vmatpush.msra.mxu1 %v1351_v43 }
 0x166   : > { %1439 = vmatmul.f32.vlgmr.msra.gmra.mxu1 %v1326_v44 }
 0x16b   : > { %1465 = vmatmul.f32.gmra.mxu2 %v1331_v31 }
 0x16c   : > { %1419 = vmatmul.f32.gmra.mxu0 %v1329_v45  ;;  %1488 = vmatmul.f32.gmra.mxu3 %v1332_v38 }
 0x16e   : > { %1442 = vmatmul.f32.gmra.mxu1 %v1330_v46 }
 0x1e1   : > { %v1417_v20 = vpop.f32.mrf.mxu0 }
 0x1e2   : > { %v1418_v48 = vadd.f32 %v2330_v13, %v1417_v20 }
 0x1e3   : > { %v1440_v49 = vpop.f32.mrf.mxu1 }
 0x1e4   : > { %v1441_v50 = vadd.f32 %v1440_v49, %v1418_v48 }
 0x1e6   : > { %v1463_v52 = vpop.f32.mrf.mxu2 }
 0x1e7   : > { %v1464_v53 = vadd.f32 %v1463_v52, %v1441_v50  ;;  %v1486_v54 = vpop.f32.mrf.mxu3 }
 0x1e9   : > { %v1487_v55 = vadd.f32 %v1486_v54, %v1464_v53  ;;  %v1420_v56 = vpop.f32.mrf.mxu0 }
 0x1ea   : > { %v1421_v57 = vadd.f32 %v2330_v13, %v1420_v56 }
 0x1eb   : > { %v1443_v58 = vpop.f32.mrf.mxu1  ;;  %v1495_v59 = vsel %vm1494_vm0, %v1487_v55, -inf }
 0x1ec   : > { %v1444_v60 = vadd.f32 %v1443_v58, %v1421_v57  ;;  %1497 = vmax.xlane.f32.xlu0 %v1495_v59 }
 0x1ee   : > { %v1466_v61 = vpop.f32.mrf.mxu2 }
 0x1ef   : > { %v1467_v62 = vadd.f32 %v1466_v61, %v1444_v60  ;;  %v1489_v63 = vpop.f32.mrf.mxu3 }
 0x1f1   : > { %v1490_v0 = vadd.f32 %v1489_v63, %v1467_v62 }
 0x1f3   : > { %v1496_v1 = vsel %vm1494_vm0, %v1490_v0, -inf }
 0x1f4   : > { %1499 = vmax.xlane.f32.xlu0 %v1496_v1 }
 0x25f   : > { %v1498_v2 = vpop.xlane.xlu0 %1497 }
 0x260   : > { %v1501_v3 = vsub.f32 %v1495_v59, %v1498_v2 }
 0x262   : > { %v1503_v4 = vmul.f32 1.442695, %v1501_v3 }
 0x264   : > { %2332 = vpow2.f32 %v1503_v4 }
 0x267   : > { %v1500_v5 = vpop.xlane.xlu0 %1499 }
 0x268   : > { %v1502_v6 = vsub.f32 %v1496_v1, %v1500_v5 }
 0x26a   : > { %v2333_v7 = vpop.eup %2332  ;;  %v1505_v8 = vmul.f32 1.442695, %v1502_v6 }
 0x26b   : > { %1507 = vadd.xlane.f32.xlu1 %v2333_v7 }
 0x26c   : > { %2334 = vpow2.f32 %v1505_v8 }
 0x272   : > { %v2335_v9 = vpop.eup %2334 }
 0x273   : > { %1509 = vadd.xlane.f32.xlu1 %v2335_v9 }
 0x2de   : > { %v1508_v10 = vpop.xlane.xlu1 %1507 }
 0x2df   : > { %2336 = vrcp.f32 %v1508_v10 }
 0x2e5   : > { %v2337_v12 = vpop.eup %2336 }
 0x2e6   : > { %v1510_v14 = vpop.xlane.xlu1 %1509  ;;  %v1513_v15 = vmul.f32 %v2337_v12, %v2333_v7 }
 0x2e7   : > { %2338 = vrcp.f32 %v1510_v14 }
 0x2e8   : > { %v1516_v16 = vmul.f32 %v2331_v11, %v1513_v15 }
 0x2ea   : > { %1518 = vadd.xlane.f32.xlu2 %v1516_v16 }
 0x2ed   : > { %v2339_v17 = vpop.eup %2338 }
 0x2ee   : > { %v1514_v18 = vmul.f32 %v2339_v17, %v2335_v9 }
 0x2f0   : > { %v1517_v19 = vmul.f32 %v2331_v11, %v1514_v18 }
 0x2f2   : > { %1520 = vadd.xlane.f32.xlu2 %v1517_v19 }
 0x35d   : > { %v1519_v21 = vpop.xlane.xlu2 %1518 }
 0x35e   : > { %v1523_v22 = vsel %vm1522_vm1, %v1519_v21, %v1487_v55 }
 0x35f   : > { %1525 = vst [vmem:[%s2973_s4] sm:$0xff] %v1523_v22 }
 0x365   : > { %v1521_v23 = vpop.xlane.xlu2 %1520 }
 0x366   : > { %v1524_v24 = vsel %vm1522_vm1, %v1521_v23, %v1490_v0 }
 0x367   : > { %1526 = vst [vmem:[%s2973_s4 + $0x8] sm:$0xff] %v1524_v24 }
 0x368 PF: > { %s14_s19 = sadd.s32 1, %s2378_s19   ;;  %s2974_s15 = smov %s2366_s16 }
 0x369   : > { %p11_p12 = scmp.ge.s32.totalorder %s14_s19, 4   ;;  %s2975_s16 = smov %s2441_s23 }
 0x36a   : > { %s2976_s17 = smov %s2374_s18  ;;  %s2977_s18 = smov %s2979_s20 }
 0x36b   :  { %13 = sbr.rel (!%p11_p12) target bundleno = 3 (0x3), region = 105 }

</bundles_post_ra>
